<compile_context>
chip_gen: v7x
topology: tpu7x:2x2x1
jax: 0.10.0
libtpu: 0.0.40
codegen_flags: <defaults>
</compile_context>

<pallas_src>
import functools

import jax
import jax.numpy as jnp
from jax.experimental import pallas as pl
from jax.experimental.pallas import tpu as pltpu

LRELU_SLOPE = 0.1


def get_padding(kernel_size, dilation=1):
    return (kernel_size * dilation - dilation) // 2


def _round_up(x, m):
    return ((x + m - 1) // m) * m


def _vmem_capacity_bytes():
    """Physical per-TensorCore VMEM, generation aware, with a safe fallback."""
    try:
        return int(pltpu.get_tpu_info().vmem_capacity_bytes)
    except Exception:
        # Conservative fallback: v7x has 64 MiB per TC (v5e/v6e have 128 MiB).
        return 64 * 2**20


def _resblock2_kernel(xl_ref, x_ref, xr_ref, w1_ref, b1_ref, w2_ref, b2_ref,
                      o_ref, *, dilation, seq_len, time_tile, halo):
    """Per grid step (batch dim squeezed):
         xl_ref : (HALO, C)  left-neighbour rows,  global [j*tT - HALO, j*tT)
         x_ref  : (tT,   C)  main time tile,       global [j*tT, (j+1)*tT)
         xr_ref : (HALO, C)  right-neighbour rows, global [(j+1)*tT, +HALO)
         w*_ref : (3C, C)    stacked conv weights [W_left; W_center; W_right]
         b*_ref : (1, C)     f32 bias
         o_ref  : (tT, C)
    """
    ext = time_tile + 2 * halo
    j = pl.program_id(1)
    g0 = j * time_tile - halo                        # global time of ext row 0

    e_idx = jax.lax.broadcasted_iota(jnp.int32, (ext, 1), 0)   # local row index
    g_idx = e_idx + g0                                         # global row index

    mm_dtype = w1_ref.dtype                          # bf16 by default

    def leaky_relu(v):
        # max(v, slope*v) == leaky_relu for slope < 1 (one VALU op fewer than
        # the compare+select form).
        return jnp.maximum(v, LRELU_SLOPE * v)

    def dilated_conv(xin, w_ref, b_ref, d):
        # y[t] = Wl @ x[t-d] + Wc @ x[t] + Wr @ x[t+d] + b, with zero padding
        # outside the *true* sequence [0, seq_len).  Shifts via XLU roll; taps
        # whose source lies outside [0, seq_len) (or outside the extended tile)
        # are masked to zero.  Each piece is cast to the matmul dtype so the
        # fused (E, 3C) operand is materialized exactly once, in mm_dtype.
        left = jnp.where((g_idx >= d) & (e_idx >= d),
                         pltpu.roll(xin, shift=d, axis=0), 0.0).astype(mm_dtype)
        center = xin.astype(mm_dtype)
        right = jnp.where((g_idx + d < seq_len) & (e_idx + d < ext),
                          pltpu.roll(xin, shift=ext - d, axis=0),
                          0.0).astype(mm_dtype)
        taps = jnp.concatenate([left, center, right], axis=-1)    # (E, 3C)
        y = jnp.dot(taps, w_ref[...], preferred_element_type=jnp.float32)
        return y + b_ref[...]                                     # (1, C) bcast

    # Halo-extended tile: rows [j*tT - HALO, (j+1)*tT + HALO).  Residual path
    # stays f32 regardless of the matmul dtype.
    xt = jnp.concatenate([xl_ref[...], x_ref[...], xr_ref[...]], axis=0)
    xt = xt.astype(jnp.float32)

    # for c in self.convs: x = c(leaky_relu(x)) + x
    y = dilated_conv(leaky_relu(xt), w1_ref, b1_ref, dilation[0]) + xt
    y = dilated_conv(leaky_relu(y), w2_ref, b2_ref, dilation[1]) + y

    o_ref[...] = y[halo:halo + time_tile, :].astype(o_ref.dtype)


def resblock2_pallas_btc(x_btc, w1, b1, w2, b2, dilation=(1, 3),
                         time_tile=None, matmul_dtype=jnp.bfloat16):
    """Primary entry point, channel-last: x_btc is (B, T, C).
    w*: (Cout, Cin, K) effective Conv1d weights (weight_norm is a
    reparameterization; its effective weight is materialized outside the
    kernel).  Returns (B, T, C).

    matmul_dtype controls the MXU operand dtype only (default bf16, f32
    accumulation); pass jnp.float32 for bit-faithful-to-f32 results."""
    B, T, C = x_btc.shape
    K = w1.shape[-1]
    assert K == 3, "ResBlock2 Pallas kernel supports kernel_size == 3 only"
    assert w1.shape == (C, C, K) and w2.shape == (C, C, K)
    assert b1.shape == (C,) and b2.shape == (C,)
    d1, d2 = int(dilation[0]), int(dilation[1])

    x_bytes = jnp.dtype(x_btc.dtype).itemsize
    w_dtype = jnp.dtype(matmul_dtype)
    w_bytes = w_dtype.itemsize

    # Sublane granule: 8 rows for 4-byte dtypes, 16 for bf16 — keeps the halo
    # DMAs and output stores on native (sublane, 128) tiles (no masked vst).
    granule = max(8, 32 // x_bytes)
    halo = _round_up(max(d1 + d2, 1), granule)   # rows needed by the 2 convs
    cp = _round_up(max(C, 128), 128)             # lane-dense channel count

    vmem_cap = _vmem_capacity_bytes()
    vmem_budget = int(0.70 * vmem_cap)           # headroom: no forced spills
    if time_tile is None:
        # Larger default tile on 128 MiB parts (v5e/v6e), smaller on v7x.
        time_tile = 1024 if vmem_cap >= 96 * 2**20 else 512

    def vmem_est(tt):
        ext = tt + 2 * halo
        est = 2 * tt * cp * x_bytes                          # main in (dbl-buf)
        est += 2 * 2 * halo * cp * x_bytes                   # two halo inputs
        est += 2 * tt * cp * x_bytes                         # output (dbl-buf)
        est += 2 * 2 * (3 * cp * cp * w_bytes + cp * 4)      # resident w + b
        # In-kernel live intermediates: xt / leaky-relu / dot results / y in
        # f32, plus each conv's (E, 3C) taps operand in the matmul dtype.
        est += 10 * ext * cp * 4 + 2 * ext * 3 * cp * w_bytes
        return est

    # Time tile: requested size, bounded by T and by the generation-aware
    # VMEM budget.
    tt = _round_up(min(int(time_tile), T), halo)
    while tt > halo and vmem_est(tt) > vmem_budget:
        tt = max(halo, _round_up(tt // 2, halo))
    if B == 1 and T > halo:
        # v7x has 2 TensorCores per chip; make sure the "parallel" grid has at
        # least 2 programs so the second core isn't idle (harmless elsewhere —
        # at most one extra grid step on single-TC parts).
        tt = max(halo, min(tt, _round_up(-(-T // 2), halo)))
    vmem_limit = int(min(max(vmem_est(tt) + 4 * 2**20, 32 * 2**20),
                         vmem_cap - 8 * 2**20))

    tp = _round_up(T, tt)
    n_tiles = tp // tt
    hpb = tt // halo                           # halo blocks per time tile
    last_halo_blk = tp // halo - 1

    # Pad time (no-op if T % tt == 0) and channels (no-op if C % 128 == 0).
    # Production callers should keep C a multiple of 128 and pick tt | T so
    # neither this pad nor the tail slice below materializes an extra copy.
    x_p = x_btc
    if tp != T or cp != C:
        x_p = jnp.pad(x_btc, ((0, 0), (0, tp - T), (0, cp - C)))

    def stack_weight(w):
        # (Cout, Cin, K) -> (K, Cin, Cout) -> zero-pad channels -> (K*Cp, Cp);
        # row blocks are [W_left; W_center; W_right], matching the in-kernel
        # tap concatenation order.
        wt = jnp.transpose(w, (2, 1, 0))
        wt = jnp.pad(wt, ((0, 0), (0, cp - C), (0, cp - C)))
        return wt.reshape(K * cp, cp).astype(w_dtype)

    def pad_bias(bv):
        return jnp.pad(bv, (0, cp - C)).reshape(1, cp).astype(jnp.float32)

    w1s, w2s = stack_weight(w1), stack_weight(w2)
    b1r, b2r = pad_bias(b1), pad_bias(b2)

    kernel = functools.partial(
        _resblock2_kernel, dilation=(d1, d2), seq_len=T, time_tile=tt, halo=halo)

    out = pl.pallas_call(
        kernel,
        out_shape=jax.ShapeDtypeStruct((B, tp, cp), x_btc.dtype),
        grid=(B, n_tiles),
        in_specs=[
            # left halo: last `halo` rows of the previous tile (clamped at j=0;
            # any tap sourcing out-of-sequence rows is zero-masked in-kernel).
            pl.BlockSpec((None, halo, cp),
                         lambda b, j: (b, jnp.maximum(j * hpb - 1, 0), 0)),
            # main time tile
            pl.BlockSpec((None, tt, cp), lambda b, j: (b, j, 0)),
            # right halo: first `halo` rows of the next tile (clamped at end)
            pl.BlockSpec((None, halo, cp),
                         lambda b, j: (b, jnp.minimum((j + 1) * hpb,
                                                      last_halo_blk), 0)),
            # weights / biases: constant index_map -> resident in VMEM,
            # never re-DMA'd across grid steps.
            pl.BlockSpec((K * cp, cp), lambda b, j: (0, 0)),
            pl.BlockSpec((1, cp), lambda b, j: (0, 0)),
            pl.BlockSpec((K * cp, cp), lambda b, j: (0, 0)),
            pl.BlockSpec((1, cp), lambda b, j: (0, 0)),
        ],
        out_specs=pl.BlockSpec((None, tt, cp), lambda b, j: (b, j, 0)),
        compiler_params=pltpu.CompilerParams(
            dimension_semantics=("parallel", "parallel"),
            vmem_limit_bytes=vmem_limit),
    )(x_p, x_p, x_p, w1s, b1r, w2s, b2r)

    if tp != T or cp != C:
        out = out[:, :T, :C]
    return out


def resblock2_pallas(x_nct, w1, b1, w2, b2, dilation=(1, 3),
                     time_tile=None, matmul_dtype=jnp.bfloat16):
    """PyTorch-layout compatibility wrapper: x_nct is (B, C, T) like nn.Conv1d.
    The transposes below are layout plumbing only; production callers should
    keep activations channel-last across the whole stack and call
    resblock2_pallas_btc directly to avoid the two extra HBM round trips."""
    x_btc = jnp.transpose(x_nct, (0, 2, 1))
    out = resblock2_pallas_btc(x_btc, w1, b1, w2, b2, dilation=dilation,
                               time_tile=time_tile, matmul_dtype=matmul_dtype)
    return jnp.transpose(out, (0, 2, 1))


# --- pure-JAX reference (correctness check only) -----------------------------
def _conv1d_ref(x, w, b, d):
    pad = get_padding(w.shape[-1], d)
    y = jax.lax.conv_general_dilated(
        x, w, window_strides=(1,), padding=[(pad, pad)], rhs_dilation=(d,),
        dimension_numbers=("NCH", "OIH", "NCH"))
    return y + b[None, :, None]


def resblock2_ref(x, w1, b1, w2, b2, dilation=(1, 3)):
    for w, b, d in ((w1, b1, dilation[0]), (w2, b2, dilation[1])):
        xt = jnp.where(x >= 0, x, LRELU_SLOPE * x)
        x = _conv1d_ref(xt, w, b, d) + x
    return x


if __name__ == "__main__":
    B, C, T, K = 2, 8, 48, 3
    key = jax.random.PRNGKey(0)
    kx, kw1, kb1, kw2, kb2 = jax.random.split(key, 5)

    x = jax.random.normal(kx, (B, C, T), dtype=jnp.float32)
    # init_weights -> N(0, 0.01); weight_norm's effective weight materialized directly.
    w1 = 0.01 * jax.random.normal(kw1, (C, C, K), dtype=jnp.float32)
    w2 = 0.01 * jax.random.normal(kw2, (C, C, K), dtype=jnp.float32)
    b1 = 0.1 * jax.random.normal(kb1, (C,), dtype=jnp.float32)
    b2 = 0.1 * jax.random.normal(kb2, (C,), dtype=jnp.float32)

    ref = resblock2_ref(x, w1, b1, w2, b2)

    # f32-matmul path, multi-tile: small time tile so halo handling across
    # T-tile seams (and both boundary clamps) is exercised; tight tolerance.
    out_f32_tiled = jax.block_until_ready(
        resblock2_pallas(x, w1, b1, w2, b2, time_tile=16,
                         matmul_dtype=jnp.float32))
    assert out_f32_tiled.shape == x.shape
    assert jnp.allclose(out_f32_tiled, ref, atol=1e-5, rtol=1e-5), \
        "f32 tiled mismatch"

    # f32-matmul path, single tile.
    out_f32_single = jax.block_until_ready(
        resblock2_pallas(x, w1, b1, w2, b2, matmul_dtype=jnp.float32))
    assert jnp.allclose(out_f32_single, ref, atol=1e-5, rtol=1e-5), \
        "f32 single-tile mismatch"

    # Default (bf16 MXU operands, f32 accumulation + f32 residual path):
    # intentional small numerics change, checked at a looser tolerance.
    out_bf16 = jax.block_until_ready(resblock2_pallas(x, w1, b1, w2, b2))
    assert out_bf16.shape == x.shape
    assert jnp.allclose(out_bf16, ref, atol=5e-2, rtol=0.0), "bf16 mismatch"

    print("KERNEL_OK")
</pallas_src>

<mosaic_0001>
module attributes {stable_mosaic.version = 11 : i64} {
  func.func @_resblock2_kernel(%arg0: i32, %arg1: i32, %arg2: memref<1x8x128xf32, #tpu.memory_space<vmem>>, %arg3: memref<1x16x128xf32, #tpu.memory_space<vmem>>, %arg4: memref<1x8x128xf32, #tpu.memory_space<vmem>>, %arg5: memref<384x128xf32, #tpu.memory_space<vmem>>, %arg6: memref<1x128xf32, #tpu.memory_space<vmem>>, %arg7: memref<384x128xf32, #tpu.memory_space<vmem>>, %arg8: memref<1x128xf32, #tpu.memory_space<vmem>>, %arg9: memref<1x16x128xf32, #tpu.memory_space<vmem>>) attributes {dimension_semantics = [#tpu.dimension_semantics<parallel>, #tpu.dimension_semantics<parallel>], iteration_bounds = array<i64: 2, 3>, scalar_prefetch = 0 : i64, scratch_operands = 0 : i64, tpu.core_type = #tpu.core_type<tc>, window_params = [{transform_indices = @transform_0, window_bounds = array<i64: 1, 8, 128>}, {transform_indices = @transform_1, window_bounds = array<i64: 1, 16, 128>}, {transform_indices = @transform_2, window_bounds = array<i64: 1, 8, 128>}, {pipeline_mode = #tpu.pipeline_mode<synchronous>, transform_indices = @transform_3, window_bounds = array<i64: 384, 128>}, {pipeline_mode = #tpu.pipeline_mode<synchronous>, transform_indices = @transform_4, window_bounds = array<i64: 1, 128>}, {pipeline_mode = #tpu.pipeline_mode<synchronous>, transform_indices = @transform_5, window_bounds = array<i64: 384, 128>}, {pipeline_mode = #tpu.pipeline_mode<synchronous>, transform_indices = @transform_6, window_bounds = array<i64: 1, 128>}, {transform_indices = @transform_7, window_bounds = array<i64: 1, 16, 128>}]} {
    %c16_i32 = arith.constant 16 : i32
    %0 = arith.muli %arg1, %c16_i32 : i32
    %c8_i32 = arith.constant 8 : i32
    %1 = arith.subi %0, %c8_i32 : i32
    %2 = tpu.iota {dimensions = array<i32: 0>} : vector<32x1xi32>
    %3 = vector.broadcast %1 : i32 to vector<32x1xi32>
    %4 = arith.addi %2, %3 : vector<32x1xi32>
    %c0 = arith.constant 0 : index
    %c0_0 = arith.constant 0 : index
    %c0_1 = arith.constant 0 : index
    %5 = vector.load %arg2[%c0, %c0_0, %c0_1] : memref<1x8x128xf32, #tpu.memory_space<vmem>>, vector<1x8x128xf32>
    %6 = vector.shape_cast %5 : vector<1x8x128xf32> to vector<8x128xf32>
    %c0_2 = arith.constant 0 : index
    %c0_3 = arith.constant 0 : index
    %c0_4 = arith.constant 0 : index
    %7 = vector.load %arg3[%c0_2, %c0_3, %c0_4] : memref<1x16x128xf32, #tpu.memory_space<vmem>>, vector<1x16x128xf32>
    %8 = vector.shape_cast %7 : vector<1x16x128xf32> to vector<16x128xf32>
    %c0_5 = arith.constant 0 : index
    %c0_6 = arith.constant 0 : index
    %c0_7 = arith.constant 0 : index
    %9 = vector.load %arg4[%c0_5, %c0_6, %c0_7] : memref<1x8x128xf32, #tpu.memory_space<vmem>>, vector<1x8x128xf32>
    %10 = vector.shape_cast %9 : vector<1x8x128xf32> to vector<8x128xf32>
    %11 = tpu.concatenate %6, %8, %10 in 0 : vector<8x128xf32>, vector<16x128xf32>, vector<8x128xf32> -> vector<32x128xf32>
    %cst = arith.constant 1.000000e-01 : f32
    %12 = vector.broadcast %cst : f32 to vector<32x128xf32>
    %13 = arith.mulf %12, %11 : vector<32x128xf32>
    %14 = arith.maximumf %11, %13 : vector<32x128xf32>
    %c1_i32 = arith.constant 1 : i32
    %15 = vector.broadcast %c1_i32 : i32 to vector<32x1xi32>
    %16 = arith.cmpi sge, %4, %15 : vector<32x1xi32>
    %c1_i32_8 = arith.constant 1 : i32
    %17 = vector.broadcast %c1_i32_8 : i32 to vector<32x1xi32>
    %18 = arith.cmpi sge, %2, %17 : vector<32x1xi32>
    %19 = arith.andi %16, %18 : vector<32x1xi1>
    %c1_i32_9 = arith.constant 1 : i32
    %20 = tpu.dynamic_rotate %14 by %c1_i32_9 dim 0 : vector<32x128xf32>, i32 -> vector<32x128xf32>
    %cst_10 = arith.constant 0.000000e+00 : f32
    %21 = vector.shape_cast %19 : vector<32x1xi1> to vector<32x1xi1>
    %22 = vector.broadcast %21 : vector<32x1xi1> to vector<32x128xi1>
    %23 = vector.broadcast %cst_10 : f32 to vector<32x128xf32>
    %24 = arith.select %22, %20, %23 : vector<32x128xi1>, vector<32x128xf32>
    %c1_i32_11 = arith.constant 1 : i32
    %25 = vector.broadcast %c1_i32_11 : i32 to vector<32x1xi32>
    %26 = arith.addi %4, %25 : vector<32x1xi32>
    %c48_i32 = arith.constant 48 : i32
    %27 = vector.broadcast %c48_i32 : i32 to vector<32x1xi32>
    %28 = arith.cmpi slt, %26, %27 : vector<32x1xi32>
    %c1_i32_12 = arith.constant 1 : i32
    %29 = vector.broadcast %c1_i32_12 : i32 to vector<32x1xi32>
    %30 = arith.addi %2, %29 : vector<32x1xi32>
    %c32_i32 = arith.constant 32 : i32
    %31 = vector.broadcast %c32_i32 : i32 to vector<32x1xi32>
    %32 = arith.cmpi slt, %30, %31 : vector<32x1xi32>
    %33 = arith.andi %28, %32 : vector<32x1xi1>
    %c31_i32 = arith.constant 31 : i32
    %34 = tpu.dynamic_rotate %14 by %c31_i32 dim 0 : vector<32x128xf32>, i32 -> vector<32x128xf32>
    %cst_13 = arith.constant 0.000000e+00 : f32
    %35 = vector.shape_cast %33 : vector<32x1xi1> to vector<32x1xi1>
    %36 = vector.broadcast %35 : vector<32x1xi1> to vector<32x128xi1>
    %37 = vector.broadcast %cst_13 : f32 to vector<32x128xf32>
    %38 = arith.select %36, %34, %37 : vector<32x128xi1>, vector<32x128xf32>
    %39 = tpu.concatenate %24, %14, %38 in 1 : vector<32x128xf32>, vector<32x128xf32>, vector<32x128xf32> -> vector<32x384xf32>
    %c0_14 = arith.constant 0 : index
    %c0_15 = arith.constant 0 : index
    %40 = vector.load %arg5[%c0_14, %c0_15] : memref<384x128xf32, #tpu.memory_space<vmem>>, vector<384x128xf32>
    %cst_16 = arith.constant dense<0.000000e+00> : vector<32x128xf32>
    %41 = tpu.matmul %39, %40, %cst_16 {dimension_numbers = #tpu.dot_dimension_numbers<[1], [0], [0], [1], [0, 0, 1, 1], [], []>} : vector<32x384xf32>, vector<384x128xf32>, vector<32x128xf32> -> vector<32x128xf32>
    %c0_17 = arith.constant 0 : index
    %c0_18 = arith.constant 0 : index
    %42 = vector.load %arg6[%c0_17, %c0_18] : memref<1x128xf32, #tpu.memory_space<vmem>>, vector<1x128xf32>
    %43 = vector.broadcast %42 : vector<1x128xf32> to vector<32x128xf32>
    %44 = arith.addf %41, %43 : vector<32x128xf32>
    %45 = arith.addf %44, %11 : vector<32x128xf32>
    %cst_19 = arith.constant 1.000000e-01 : f32
    %46 = vector.broadcast %cst_19 : f32 to vector<32x128xf32>
    %47 = arith.mulf %46, %45 : vector<32x128xf32>
    %48 = arith.maximumf %45, %47 : vector<32x128xf32>
    %c3_i32 = arith.constant 3 : i32
    %49 = vector.broadcast %c3_i32 : i32 to vector<32x1xi32>
    %50 = arith.cmpi sge, %4, %49 : vector<32x1xi32>
    %c3_i32_20 = arith.constant 3 : i32
    %51 = vector.broadcast %c3_i32_20 : i32 to vector<32x1xi32>
    %52 = arith.cmpi sge, %2, %51 : vector<32x1xi32>
    %53 = arith.andi %50, %52 : vector<32x1xi1>
    %c3_i32_21 = arith.constant 3 : i32
    %54 = tpu.dynamic_rotate %48 by %c3_i32_21 dim 0 : vector<32x128xf32>, i32 -> vector<32x128xf32>
    %cst_22 = arith.constant 0.000000e+00 : f32
    %55 = vector.shape_cast %53 : vector<32x1xi1> to vector<32x1xi1>
    %56 = vector.broadcast %55 : vector<32x1xi1> to vector<32x128xi1>
    %57 = vector.broadcast %cst_22 : f32 to vector<32x128xf32>
    %58 = arith.select %56, %54, %57 : vector<32x128xi1>, vector<32x128xf32>
    %c3_i32_23 = arith.constant 3 : i32
    %59 = vector.broadcast %c3_i32_23 : i32 to vector<32x1xi32>
    %60 = arith.addi %4, %59 : vector<32x1xi32>
    %c48_i32_24 = arith.constant 48 : i32
    %61 = vector.broadcast %c48_i32_24 : i32 to vector<32x1xi32>
    %62 = arith.cmpi slt, %60, %61 : vector<32x1xi32>
    %c3_i32_25 = arith.constant 3 : i32
    %63 = vector.broadcast %c3_i32_25 : i32 to vector<32x1xi32>
    %64 = arith.addi %2, %63 : vector<32x1xi32>
    %c32_i32_26 = arith.constant 32 : i32
    %65 = vector.broadcast %c32_i32_26 : i32 to vector<32x1xi32>
    %66 = arith.cmpi slt, %64, %65 : vector<32x1xi32>
    %67 = arith.andi %62, %66 : vector<32x1xi1>
    %c29_i32 = arith.constant 29 : i32
    %68 = tpu.dynamic_rotate %48 by %c29_i32 dim 0 : vector<32x128xf32>, i32 -> vector<32x128xf32>
    %cst_27 = arith.constant 0.000000e+00 : f32
    %69 = vector.shape_cast %67 : vector<32x1xi1> to vector<32x1xi1>
    %70 = vector.broadcast %69 : vector<32x1xi1> to vector<32x128xi1>
    %71 = vector.broadcast %cst_27 : f32 to vector<32x128xf32>
    %72 = arith.select %70, %68, %71 : vector<32x128xi1>, vector<32x128xf32>
    %73 = tpu.concatenate %58, %48, %72 in 1 : vector<32x128xf32>, vector<32x128xf32>, vector<32x128xf32> -> vector<32x384xf32>
    %c0_28 = arith.constant 0 : index
    %c0_29 = arith.constant 0 : index
    %74 = vector.load %arg7[%c0_28, %c0_29] : memref<384x128xf32, #tpu.memory_space<vmem>>, vector<384x128xf32>
    %cst_30 = arith.constant dense<0.000000e+00> : vector<32x128xf32>
    %75 = tpu.matmul %73, %74, %cst_30 {dimension_numbers = #tpu.dot_dimension_numbers<[1], [0], [0], [1], [0, 0, 1, 1], [], []>} : vector<32x384xf32>, vector<384x128xf32>, vector<32x128xf32> -> vector<32x128xf32>
    %c0_31 = arith.constant 0 : index
    %c0_32 = arith.constant 0 : index
    %76 = vector.load %arg8[%c0_31, %c0_32] : memref<1x128xf32, #tpu.memory_space<vmem>>, vector<1x128xf32>
    %77 = vector.broadcast %76 : vector<1x128xf32> to vector<32x128xf32>
    %78 = arith.addf %75, %77 : vector<32x128xf32>
    %79 = arith.addf %78, %45 : vector<32x128xf32>
    %80 = vector.extract_strided_slice %79 {offsets = [8, 0], sizes = [16, 128], strides = [1, 1]} : vector<32x128xf32> to vector<16x128xf32>
    %c0_33 = arith.constant 0 : index
    %c0_34 = arith.constant 0 : index
    %c0_35 = arith.constant 0 : index
    %81 = vector.load %arg9[%c0_33, %c0_34, %c0_35] : memref<1x16x128xf32, #tpu.memory_space<vmem>>, vector<1x16x128xf32>
    %82 = vector.shape_cast %81 : vector<1x16x128xf32> to vector<16x128xf32>
    %83 = vector.shape_cast %80 : vector<16x128xf32> to vector<1x16x128xf32>
    tpu.vector_store %arg9[%c0_33, %c0_34, %c0_35], %83 {strides = array<i32>} : memref<1x16x128xf32, #tpu.memory_space<vmem>>, vector<1x16x128xf32>,
    return
  }
  func.func @transform_0(%arg0: i32, %arg1: i32) -> (i32, i32, i32) {
    %c2_i32 = arith.constant 2 : i32
    %0 = arith.muli %arg1, %c2_i32 : i32
    %c1_i32 = arith.constant 1 : i32
    %1 = arith.subi %0, %c1_i32 : i32
    %c0_i32 = arith.constant 0 : i32
    %2 = arith.maxsi %1, %c0_i32 : i32
    %c0_i32_0 = arith.constant 0 : i32
    %c0_i32_1 = arith.constant 0 : i32
    return %arg0, %2, %c0_i32_0 : i32, i32, i32
  }
  func.func @transform_1(%arg0: i32, %arg1: i32) -> (i32, i32, i32) {
    %c0_i32 = arith.constant 0 : i32
    %c0_i32_0 = arith.constant 0 : i32
    return %arg0, %arg1, %c0_i32 : i32, i32, i32
  }
  func.func @transform_2(%arg0: i32, %arg1: i32) -> (i32, i32, i32) {
    %c1_i32 = arith.constant 1 : i32
    %0 = arith.addi %arg1, %c1_i32 : i32
    %c2_i32 = arith.constant 2 : i32
    %1 = arith.muli %0, %c2_i32 : i32
    %c5_i32 = arith.constant 5 : i32
    %2 = arith.minsi %1, %c5_i32 : i32
    %c0_i32 = arith.constant 0 : i32
    %c0_i32_0 = arith.constant 0 : i32
    return %arg0, %2, %c0_i32 : i32, i32, i32
  }
  func.func @transform_3(%arg0: i32, %arg1: i32) -> (i32, i32) {
    %c0_i32 = arith.constant 0 : i32
    %c0_i32_0 = arith.constant 0 : i32
    %c0_i32_1 = arith.constant 0 : i32
    return %c0_i32, %c0_i32_0 : i32, i32
  }
  func.func @transform_4(%arg0: i32, %arg1: i32) -> (i32, i32) {
    %c0_i32 = arith.constant 0 : i32
    %c0_i32_0 = arith.constant 0 : i32
    %c0_i32_1 = arith.constant 0 : i32
    return %c0_i32, %c0_i32_0 : i32, i32
  }
  func.func @transform_5(%arg0: i32, %arg1: i32) -> (i32, i32) {
    %c0_i32 = arith.constant 0 : i32
    %c0_i32_0 = arith.constant 0 : i32
    %c0_i32_1 = arith.constant 0 : i32
    return %c0_i32, %c0_i32_0 : i32, i32
  }
  func.func @transform_6(%arg0: i32, %arg1: i32) -> (i32, i32) {
    %c0_i32 = arith.constant 0 : i32
    %c0_i32_0 = arith.constant 0 : i32
    %c0_i32_1 = arith.constant 0 : i32
    return %c0_i32, %c0_i32_0 : i32, i32
  }
  func.func @transform_7(%arg0: i32, %arg1: i32) -> (i32, i32, i32) {
    %c0_i32 = arith.constant 0 : i32
    %c0_i32_0 = arith.constant 0 : i32
    return %arg0, %arg1, %c0_i32 : i32, i32, i32
  }
}

</mosaic_0001>

<bundles_post_ra>
// kernel: tpu_custom_call.1
= control target key start
LH: loop header
LB: loop body
LE: loop exit
PB: predicated region body
PF: predicated region fallthrough
CT: control target
= control target key end

     0   :  { %s2831_s0 = inlined_call_operand.hbm [shape: f32[2,48,128], index: 0, kind: input, shape index: {}]   ;;  %s2832_s1 = inlined_call_operand.hbm [shape: f32[2,48,128], index: 1, kind: input, shape index: {}]   ;;  %s2833_s2 = inlined_call_operand.hbm [shape: f32[2,48,128], index: 2, kind: input, shape index: {}]   ;;  %s2834_s3 = inlined_call_operand.hbm [shape: f32[384,128], index: 3, kind: input, shape index: {}]   ;;  %s2835_s4 = inlined_call_operand.vmem [shape: f32[1,128], index: 4, kind: input, shape index: {}]   ;;  %s2836_s5 = inlined_call_operand.hbm [shape: f32[384,128], index: 5, kind: input, shape index: {}]   ;;  %s2837_s6 = inlined_call_operand.vmem [shape: f32[1,128], index: 6, kind: input, shape index: {}]   ;;  %s2838_s7 = inlined_call_operand.hbm [shape: f32[2,48,128], index: 7, kind: output, shape index: {}]  }
   0x1   :  { %2870 = sst [smem:[#allocation32_spill]] %s2832_s1 }
   0x2   :  { %2871 = sst [smem:[#allocation33_spill]] %s2834_s3 }
   0x3   :  { %2872 = sst [smem:[#allocation34_spill]] %s2835_s4 }
   0x4   :  { %2873 = sst [smem:[#allocation35_spill]] %s2836_s5 }
   0x5   :  { %2874 = sst [smem:[#allocation36_spill]] %s2837_s6 }
   0x6   :  { %2875 = sst [smem:[#allocation37_spill]] %s2838_s7 }
   0x7   :  { %12 = vsyncpa [#allocation3], 0 }
   0x8   :  { %14 = vsyncpa [#allocation3 + $0x1], 0 }
   0x9   :  { %15 = vsyncpa [#allocation6], 0 }
   0xa   :  { %17 = vsyncpa [#allocation6 + $0x1], 0 }
   0xb   :  { %18 = vsyncpa [#allocation9], 0 }
   0xc   :  { %19 = vsyncpa [#allocation4], 0 }
   0xd   :  { %21 = vsyncpa [#allocation4 + $0x1], 0  ;;  %s2176_s24 = smov 0   ;;  %s2178_s25 = smov 0  }
   0xe   :  { %s2180_s26 = smov 0   ;;  %s2182_s27 = smov 0  }
   0xf   :  { %s2184_s28 = smov 0   ;;  %s2186_s29 = smov 0  }
  0x10   :  { %s2188_s30 = smov 0   ;;  %s2190_s8 = smov 0  }
  0x11   :  { %s2192_s9 = smov 0   ;;  %s2194_s10 = smov 0  }
  0x12   :  { %s2196_s11 = smov 0   ;;  %s2198_s12 = smov 0  }
  0x13   :  { %s2200_s13 = smov 0   ;;  %s2202_s14 = smov 0  }
  0x14 LB: > { %2876 = sst [smem:[#allocation17_spill]] %s2084_s27  ;;  %s2247_s15 = sadd.s32 4294967295, %s2124_s14   ;;  %s2124_s14 = sphi %s2202_s14, %s27_s14   ;;  %s2120_s13 = sphi %s2200_s13, %s2949_s13   ;;  %s2116_s12 = sphi %s2198_s12, %s2948_s12   ;;  %s2112_s11 = sphi %s2196_s11, %s2947_s11   ;;  %s2108_s10 = sphi %s2194_s10, %s2946_s10   ;;  %s2104_s9 = sphi %s2192_s9, %s2957_s9   ;;  %s2100_s8 = sphi %s2190_s8, %s2956_s8   ;;  %s2096_s30 = sphi %s2188_s30, %s2955_s30   ;;  %s2092_s29 = sphi %s2186_s29, %s2954_s29   ;;  %s2088_s28 = sphi %s2184_s28, %s2953_s28   ;;  %s2084_s27 = sphi %s2182_s27, %s2943_s27   ;;  %s2080_s26 = sphi %s2180_s26, %s2952_s26   ;;  %s2076_s25 = sphi %s2178_s25, %s2951_s25   ;;  %s2072_s24 = sphi %s2176_s24, %s2950_s24  }
  0x15   : > { %2877 = sst [smem:[#allocation18_spill]] %s2088_s28  ;;  %p1271_p0 = scmp.ge.s32.totalorder %s2124_s14, 1 }
  0x16   : > { %2878 = sst [smem:[#allocation19_spill]] %s2100_s8  ;;  %p2840_p1 = scmp.eq.s32.totalorder %s2247_s15, 0 }
  0x17   : > { %2879 = sst [smem:[#allocation20_spill]] %s2108_s10  ;;  %p256_p3 = scmp.lt.s32.totalorder %s2124_s14, 7 }
  0x18   : > { %2880 = sst [smem:[#allocation21_spill]] %s2112_s11  ;;  %s2126_s17 = smov [#allocation8]  }
  0x19   : > { %2881 = sst [smem:[#allocation22_spill]] %s2116_s12  ;;  %p2253_p4 = pnand %p1271_p0, %p256_p3 }
  0x1a   : > { %2882 = sst [smem:[#allocation23_spill]] %s2120_s13  ;;  %s268_s18 = sshll.u32 %s2126_s17, 4  ;;  %s269_s18 = int_to_ptr.vmem [resolvable:$true] %s268_s18 }
  0x1b   : > { %s2883_s16 = scalar_select %p2253_p4, 1, 0 }
  0x1c   : > { %p1675_p5 = pneg %p2253_p4  ;;  %s2886_s3 = sld [smem:[#allocation33_spill]] }
  0x1d   : > { %2884 = sst [smem:[#allocation24_spill]] %s2883_s16 }
  0x1e   : > { %p2261_p6 = pnand %p1675_p5, %p2840_p1 }
  0x20   : > { %p2858_p8 = pneg %p2261_p6 }
  0x22   : > { %s1820_s22 = scalar_lea.hbm %s2886_s3, 6144 }
  0x23   : > { %p1821_p7 = scmp.ne.s32.totalorder %s2886_s3, %s1820_s22  ;;  %p1827_p11 = scmp.lt.u32.totalorder %s1820_s22, %s2886_s3 }
  0x25   : > { %p1823_p9 = pnand %p2858_p8, %p1821_p7 }
  0x27   : > { %p1824_p10 = pneg %p1823_p9 }
  0x29   : > { %p1829_p12 = pnand %p1827_p11, %p1824_p10 }
  0x2b   : > { %1832 = shalt.err (!%p1829_p12)
}
  0x2c   : > { %s1833_s20 = scalar_lea.vmem %s269_s18, 6144  ;;  %p1841_p5 = scmp.lt.s32.totalorder %s269_s18, %s269_s18 }
  0x2d   : > { %p1834_p13 = scmp.ne.s32.totalorder %s269_s18, %s1833_s20  ;;  %p1842_p2 = scmp.lt.s32.totalorder %s1833_s20, %s1833_s20 }
  0x2f   : > { %p1836_p0 = pnand %p1834_p13, %p2858_p8  ;;  %p1843_p1 = por %p1842_p2, %p1841_p5 }
  0x31   : > { %p1837_p3 = pneg %p1836_p0 }
  0x33   : > { %p1844_p4 = pnand %p1843_p1, %p1837_p3 }
  0x35   : > { %1847 = shalt.err (!%p1844_p4)
}
  0x36   : > { %s2842_s7 = smov 128   ;;  %s2844_s6 = smov 8  }
  0x37   : > { %1678 = dma.hbm_to_vmem [thread:$0]  (!%p2261_p6), %s2886_s3, 6144, %s269_s18, [#allocation9], %s2842_s7, %s2842_s7, %s2844_s6  }
  0x38   : > { %s1264_s23 = sadd.s32 4294967294, %s2124_s14   ;;  %s2292_s17 = sshll.u32 %s2116_s12, 1 }
  0x39   : > { %p2857_p1 = scmp.eq.s32.totalorder %s2124_s14, 0  ;;  %p91_p2 = scmp.ne.s32.totalorder %s2092_s29, %s2088_s28 }
  0x3a   : > { %p97_p4 = scmp.ne.s32.totalorder %s2088_s28, %s2084_s27  ;;  %p249_p7 = scmp.eq.s32.totalorder %s1264_s23, 5 }
  0x3b   : > { %p2856_p9 = scmp.lt.s32.totalorder %s2124_s14, 6  ;;  %p2303_p10 = por %p91_p2, %p2857_p1 }
  0x3c   : > { %p2888_p11 = scmp.eq.s32.totalorder %s2247_s15, 0  ;;  %p2891_p13 = scmp.eq.s32.totalorder %s2247_s15, 5 }
  0x3d   : > { %p2319_p3 = por %p249_p7, %p97_p4  ;;  %s2324_s23 = smul.u32 6, %s2120_s13 }
  0x3e   : > { %p2309_p12 = por %p97_p4, %p2888_p11  ;;  %p2315_p0 = por %p2891_p13, %p91_p2 }
  0x3f   : > { %s2894_s22 = scalar_select %p2319_p3, 1, 0 }
  0x40   : > { %s2889_s18 = scalar_select %p2309_p12, 1, 0 }
  0x41   : > { %s2892_s21 = scalar_select %p2315_p0, 1, 0 }
  0x42   : > { %2890 = sst [smem:[#allocation25_spill]] %s2889_s18  ;;  %s325_s20 = sand.u32 1, %s2124_s14  }
  0x43   : > { %2893 = sst [smem:[#allocation26_spill]] %s2892_s21  ;;  %s327_s7 = sand.u32 1, %s2092_s29  }
  0x44   : > { %2895 = sst [smem:[#allocation27_spill]] %s2894_s22  ;;  %s1279_s6 = sshll.u32 %s327_s7, 4 }
  0x45   : > { %s335_s3 = sadd.s32 %s2324_s23, %s2292_s17  ;;  %s2896_s1 = sld [smem:[#allocation32_spill]] }
  0x46   : > { %s1281_s27 = sshll.u32 %s335_s3, 7  ;;  %s329_s21 = scalar_lea.vmem [#allocation5], %s1279_s6 }
  0x47   : > { %s338_s28 = sshll.u32 %s329_s21, 4  ;;  %p2341_p5 = pnand %p2856_p9, %p2303_p10  ;;  %s2335_s28 = int_to_ptr.vmem [resolvable:$true] %s338_s28 }
  0x48   : > { %s2129_s3 = smov [#allocation10]  }
  0x49   : > { %s2345_s4 = sshll.u32 %s2129_s3, 4  ;;  %p1850_p4 = pneg %p2341_p5  ;;  %s285_s4 = int_to_ptr.vmem [resolvable:$true] %s2345_s4 }
  0x4b   : > { %s2333_s18 = scalar_lea.hbm %s2896_s1, %s1281_s27  ;;  %s2347_s27 = scalar_lea.sflag [#allocation6], %s325_s20 }
  0x4c   : > { %2898 = sst [smem:[#allocation28_spill]] %s2347_s27  ;;  %s1848_s10 = scalar_lea.hbm %s2333_s18, 256 }
  0x4d   : > { %p1849_p2 = scmp.ne.s32.totalorder %s2333_s18, %s1848_s10  ;;  %s1853_s6 = scalar_lea.hbm %s2896_s1, 1536 }
  0x4e   : > { %p1854_p10 = scmp.lt.u32.totalorder %s2333_s18, %s2896_s1  ;;  %p1855_p13 = scmp.lt.u32.totalorder %s1853_s6, %s1848_s10 }
  0x4f   : > { %p1851_p7 = pnand %p1850_p4, %p1849_p2  ;;  %p1857_p1 = scmp.lt.u32.totalorder %s1848_s10, %s2333_s18 }
  0x50   : > { %p1856_p9 = por %p1855_p13, %p1854_p10 }
  0x51   : > { %p1852_p11 = pneg %p1851_p7 }
  0x52   : > { %p1858_p8 = por %p1857_p1, %p1856_p9 }
  0x54   : > { %p1859_p3 = pnand %p1858_p8, %p1852_p11 }
  0x56   : > { %1862 = shalt.err (!%p1859_p3)
}
  0x57   : > { %s1863_s20 = scalar_lea.vmem %s2335_s28, 256  ;;  %s2130_s3 = smov [#allocation5]  }
  0x58   : > { %p1864_p2 = scmp.ne.s32.totalorder %s2335_s28, %s1863_s20  ;;  %s1868_s11 = sshll.u32 %s2130_s3, 4  ;;  %s1869_s11 = int_to_ptr.vmem [resolvable:$false] %s1868_s11 }
  0x59   : > { %s1870_s16 = scalar_lea.vmem %s1869_s11, 512  ;;  %p1871_p12 = scmp.lt.s32.totalorder %s2335_s28, %s1869_s11 }
  0x5a   : > { %p1866_p7 = pnand %p1864_p2, %p1850_p4  ;;  %p1872_p10 = scmp.lt.s32.totalorder %s1870_s16, %s1863_s20 }
  0x5c   : > { %p1867_p0 = pneg %p1866_p7  ;;  %p1873_p13 = por %p1872_p10, %p1871_p12 }
  0x5e   : > { %p1874_p1 = pnand %p1873_p13, %p1867_p0 }
  0x60   : > { %1877 = shalt.err (!%p1874_p1)
}
  0x61   : > { %s2899_s10 = smov 8   ;;  %s2900_s7 = smov 128  }
  0x62   : > { %1688 = dma.hbm_to_vmem [thread:$0]  (!%p2341_p5), %s2333_s18, 256, %s2335_s28, %s2347_s27, %s2900_s7, %s2900_s7, %s2899_s10  }
  0x63   : > { %s2901_s5 = sld [smem:[#allocation35_spill]]  ;;  %p2902_p9 = pneg %p2261_p6 }
  0x69   : > { %s1878_s3 = scalar_lea.hbm %s2901_s5, 6144 }
  0x6a   : > { %p1879_p8 = scmp.ne.s32.totalorder %s2901_s5, %s1878_s3  ;;  %p1885_p3 = scmp.lt.u32.totalorder %s1878_s3, %s2901_s5 }
  0x6c   : > { %p1881_p12 = pnand %p1879_p8, %p2902_p9 }
  0x6e   : > { %p1882_p0 = pneg %p1881_p12 }
  0x70   : > { %p1887_p4 = pnand %p1885_p3, %p1882_p0 }
  0x72   : > { %1890 = shalt.err (!%p1887_p4)
}
  0x73   : > { %s1891_s28 = scalar_lea.vmem %s285_s4, 6144  ;;  %p2903_p11 = pmov %p2902_p9 }
  0x74   : > { %p1892_p5 = scmp.ne.s32.totalorder %s285_s4, %s1891_s28  ;;  %p1899_p10 = scmp.lt.s32.totalorder %s285_s4, %s285_s4 }
  0x75   : > { %p1900_p13 = scmp.lt.s32.totalorder %s1891_s28, %s1891_s28 }
  0x76   : > { %p1894_p2 = pnand %p1892_p5, %p2903_p11 }
  0x77   : > { %p1901_p1 = por %p1900_p13, %p1899_p10 }
  0x78   : > { %p1895_p7 = pneg %p1894_p2 }
  0x7a   : > { %p1902_p8 = pnand %p1901_p1, %p1895_p7 }
  0x7c   : > { %1905 = shalt.err (!%p1902_p8)
}
  0x7d   : > { %1681 = dma.hbm_to_vmem [thread:$0]  (!%p2261_p6), %s2901_s5, 6144, %s285_s4, [#allocation9], %s2900_s7, %s2900_s7, %s2899_s10  }
  0x7e   : > { %s36_s21 = sadd.s32 1, %s2116_s12  ;;  %s39_s3 = sadd.s32 1, %s2120_s13 }
  0x7f   : > { %p37_p9 = scmp.ge.s32.totalorder %s36_s21, 3  ;;  %s1266_s19 = sadd.s32 4294967295, %s2292_s17 }
  0x80   : > { %p45_p12 = scmp.gt.s32.totalorder %s1266_s19, 0  ;;  %s56_s20 = sadd.s32 1, %s2104_s9 }
  0x81   : > { %s2959_s21 = smov (%p37_p9, %s36_s21), 0  ;;  %s2961_s3 = smov (!%p37_p9, %s39_s3), %s2120_s13 }
  0x82   : > { %2904 = sst [smem:[#allocation29_spill]] %s2959_s21  ;;  %s2963_s19 = smov (!%p45_p12, %s1266_s19), 0 }
  0x83   : > { %p41_p0 = scmp.ge.s32.totalorder %s2961_s3, 2  ;;  %s1267_s4 = sshll.u32 %s2959_s21, 1 }
  0x84   : > { %s1268_s10 = sadd.s32 4294967295, %s1267_s4  ;;  %p63_p6 = scmp.ne.s32.totalorder %s2104_s9, %s2100_s8 }
  0x85   : > { %s2965_s3 = smov (%p41_p0, %s2961_s3), 0  ;;  %p49_p3 = scmp.gt.s32.totalorder %s1268_s10, 0 }
  0x86   : > { %2905 = sst [smem:[#allocation30_spill]] %s2965_s3  ;;  %p2906_p4 = scmp.eq.s32.totalorder %s2124_s14, 0 }
  0x87   : > { %s2422_s11 = ssub.s32 %s2120_s13, %s2965_s3  ;;  %p69_p11 = scmp.ne.s32.totalorder %s2100_s8, %s2096_s30 }
  0x88   : > { %p2416_p5 = por %p2906_p4, %p63_p6  ;;  %s2967_s10 = smov (!%p49_p3, %s1268_s10), 0 }
  0x89   : > { %p2908_p2 = scmp.eq.s32.totalorder %s2247_s15, 0  ;;  %s80_s16 = ssub.s32 %s2116_s12, %s2959_s21 }
  0x8a   : > { %s52_s28 = ssub.s32 %s2963_s19, %s2967_s10  ;;  %s81_s18 = sor.u32 %s80_s16, %s2422_s11 }
  0x8b   : > { %p2428_p7 = por %p2908_p2, %p69_p11  ;;  %s53_s6 = sor.u32 %s52_s28, %s2422_s11 }
  0x8c   : > { %p82_p10 = scmp.eq.s32.totalorder %s81_s18, 0  ;;  %p54_p13 = scmp.eq.s32.totalorder %s53_s6, 0 }
  0x8d   : > { %s2909_s22 = scalar_select %p2428_p7, 1, 0 }
  0x8e   : > { %s2436_s1 = sadd.s32 2, %s1267_s4  ;;  %s2911_s5 = sadd.s32 1, %s2092_s29 }
  0x8f   : > { %2910 = sst [smem:[#allocation31_spill]] %s2909_s22  ;;  %s301_s13 = sand.u32 1, %s2104_s9  }
  0x90   : > { %s2441_s3 = scalar_select %p82_p10, %s2092_s29, %s2911_s5  }
  0x91   : > { %s2444_s30 = scalar_select %p54_p13, %s2104_s9, %s56_s20  }
  0x92   : > { %s1275_s8 = sshll.u32 %s301_s13, 3  ;;  %s314_s22 = sadd.s32 %s2324_s23, %s2963_s19 }
  0x93   : > { %s1278_s21 = sshll.u32 %s314_s22, 7  ;;  %s305_s10 = scalar_lea.vmem [#allocation2], %s1275_s8 }
  0x94   : > { %s318_s16 = sshll.u32 %s305_s10, 4  ;;  %s2452_s28 = scalar_lea.hbm %s2831_s0, %s1278_s21  ;;  %s2454_s16 = int_to_ptr.vmem [resolvable:$true] %s318_s16 }
  0x95   : > { %p2912_p8 = scmp.lt.s32.totalorder %s2124_s14, 6  ;;  %s302_s8 = scalar_lea.sflag [#allocation3], %s301_s13 }
  0x96   : > { %s1906_s19 = scalar_lea.hbm %s2452_s28, 128  ;;  %s1911_s21 = scalar_lea.hbm %s2831_s0, 1536 }
  0x97   : > { %p2460_p9 = pnand %p2912_p8, %p2416_p5  ;;  %p1907_p12 = scmp.ne.s32.totalorder %s2452_s28, %s1906_s19 }
  0x98   : > { %p1912_p4 = scmp.lt.u32.totalorder %s2452_s28, %s2831_s0  ;;  %p1913_p5 = scmp.lt.u32.totalorder %s1911_s21, %s1906_s19 }
  0x99   : > { %p1908_p0 = pneg %p2460_p9  ;;  %p1915_p2 = scmp.lt.u32.totalorder %s1906_s19, %s2452_s28 }
  0x9a   : > { %p1914_p11 = por %p1913_p5, %p1912_p4 }
  0x9b   : > { %p1909_p6 = pnand %p1908_p0, %p1907_p12 }
  0x9c   : > { %p1916_p10 = por %p1915_p2, %p1914_p11 }
  0x9d   : > { %p1910_p3 = pneg %p1909_p6 }
  0x9f   : > { %p1917_p13 = pnand %p1916_p10, %p1910_p3 }
  0xa1   : > { %1920 = shalt.err (!%p1917_p13)
}
  0xa2   : > { %s1921_s13 = scalar_lea.vmem %s2454_s16, 128  ;;  %s2131_s7 = smov [#allocation2]  }
  0xa3   : > { %p1922_p8 = scmp.ne.s32.totalorder %s2454_s16, %s1921_s13  ;;  %s1926_s22 = sshll.u32 %s2131_s7, 4  ;;  %s1927_s22 = int_to_ptr.vmem [resolvable:$false] %s1926_s22 }
  0xa4   : > { %s1928_s18 = scalar_lea.vmem %s1927_s22, 256  ;;  %p1929_p1 = scmp.lt.s32.totalorder %s2454_s16, %s1927_s22 }
  0xa5   : > { %p1924_p12 = pnand %p1922_p8, %p1908_p0  ;;  %p1930_p4 = scmp.lt.s32.totalorder %s1928_s18, %s1921_s13 }
  0xa7   : > { %p1925_p6 = pneg %p1924_p12  ;;  %p1931_p5 = por %p1930_p4, %p1929_p1 }
  0xa9   : > { %p1932_p11 = pnand %p1931_p5, %p1925_p6 }
  0xab   : > { %1935 = shalt.err (!%p1932_p11)
}
  0xac   : > { %1685 = dma.hbm_to_vmem [thread:$0]  (!%p2460_p9), %s2452_s28, 128, %s2454_s16, %s302_s8  }
  0xad   : > { %s1318_s6 = sadd.s32 2, %s2292_s17  ;;  %s120_s10 = sadd.s32 1, %s2080_s26 }
  0xae   : > { %p109_p1 = scmp.lt.s32.totalorder %s1318_s6, 5  ;;  %p127_p0 = scmp.ne.s32.totalorder %s2080_s26, %s2076_s25 }
  0xaf   : > { %p2914_p3 = scmp.lt.s32.totalorder %s2436_s1, 5  ;;  %p2915_p2 = scmp.eq.s32.totalorder %s2124_s14, 0 }
  0xb0   : > { %s2971_s6 = smov (!%p109_p1, %s1318_s6), 5  ;;  %p133_p13 = scmp.ne.s32.totalorder %s2076_s25, %s2072_s24 }
  0xb1   : > { %s2969_s1 = smov (!%p2914_p3, %s2436_s1), 5  ;;  %p2498_p10 = por %p127_p0, %p2915_p2 }
  0xb2   : > { %s116_s19 = ssub.s32 %s2971_s6, %s2969_s1  ;;  %s350_s12 = sand.u32 1, %s2080_s26  }
  0xb3   : > { %s117_s27 = sor.u32 %s116_s19, %s2422_s11  ;;  %p2917_p9 = scmp.eq.s32.totalorder %s2247_s15, 0 }
  0xb4   : > { %p118_p12 = scmp.eq.s32.totalorder %s117_s27, 0  ;;  %s1282_s16 = sshll.u32 %s350_s12, 3 }
  0xb5   : > { %p2508_p8 = por %p133_p13, %p2917_p9  ;;  %s361_s28 = sadd.s32 %s2324_s23, %s2971_s6 }
  0xb6   : > { %s2514_s8 = scalar_select %p118_p12, %s2080_s26, %s120_s10  }
  0xb7   : > { %s2918_s17 = scalar_select %p2508_p8, 1, 0 }
  0xb8   : > { %s1284_s21 = sshll.u32 %s361_s28, 7  ;;  %s352_s20 = scalar_lea.vmem [#allocation7], %s1282_s16 }
  0xb9   : > { %s365_s4 = sshll.u32 %s352_s20, 4  ;;  %s2519_s24 = scalar_lea.hbm %s2833_s2, %s1284_s21  ;;  %s2521_s4 = int_to_ptr.vmem [resolvable:$true] %s365_s4 }
  0xba   : > { %p2919_p6 = scmp.lt.s32.totalorder %s2124_s14, 6  ;;  %s1936_s23 = scalar_lea.hbm %s2519_s24, 128 }
  0xbb   : > { %p1937_p5 = scmp.ne.s32.totalorder %s2519_s24, %s1936_s23  ;;  %s1941_s18 = scalar_lea.hbm %s2833_s2, 1536 }
  0xbc   : > { %p2527_p4 = pnand %p2919_p6, %p2498_p10  ;;  %p1942_p3 = scmp.lt.u32.totalorder %s2519_s24, %s2833_s2 }
  0xbd   : > { %p1943_p2 = scmp.lt.u32.totalorder %s1941_s18, %s1936_s23  ;;  %p1945_p13 = scmp.lt.u32.totalorder %s1936_s23, %s2519_s24 }
  0xbe   : > { %p1938_p11 = pneg %p2527_p4 }
  0xbf   : > { %p1944_p10 = por %p1943_p2, %p1942_p3 }
  0xc0   : > { %p1939_p1 = pnand %p1938_p11, %p1937_p5 }
  0xc1   : > { %p1946_p9 = por %p1945_p13, %p1944_p10 }
  0xc2   : > { %p1940_p0 = pneg %p1939_p1 }
  0xc4   : > { %p1947_p12 = pnand %p1946_p9, %p1940_p0 }
  0xc6   : > { %1950 = shalt.err (!%p1947_p12)
}
  0xc7   : > { %s1951_s5 = scalar_lea.vmem %s2521_s4, 128  ;;  %s2132_s19 = smov [#allocation7]  }
  0xc8   : > { %p1952_p6 = scmp.ne.s32.totalorder %s2521_s4, %s1951_s5  ;;  %s1956_s12 = sshll.u32 %s2132_s19, 4  ;;  %s1957_s12 = int_to_ptr.vmem [resolvable:$false] %s1956_s12 }
  0xc9   : > { %s1958_s27 = scalar_lea.vmem %s1957_s12, 256  ;;  %p1959_p8 = scmp.lt.s32.totalorder %s2521_s4, %s1957_s12 }
  0xca   : > { %p1954_p5 = pnand %p1952_p6, %p1938_p11  ;;  %p1960_p3 = scmp.lt.s32.totalorder %s1958_s27, %s1951_s5 }
  0xcc   : > { %p1955_p1 = pneg %p1954_p5  ;;  %p1961_p2 = por %p1960_p3, %p1959_p8 }
  0xce   : > { %p1962_p10 = pnand %p1961_p2, %p1955_p1 }
  0xd0   : > { %1965 = shalt.err (!%p1962_p10)
}
  0xd1   : > { %s2921_s16 = sld [smem:[#allocation28_spill]]  ;;  %s2922_s28 = sld [smem:[#allocation24_spill]] }
  0xd7   : > { %1691 = dma.hbm_to_vmem [thread:$0]  (!%p2527_p4), %s2519_s24, 128, %s2521_s4, %s2921_s16  }
  0xd8   : > { %p2923_p0 = scmp.ne.s32.totalorder %s2922_s28, 0 }
  0xd9   : > { %s2924_s21 = sld [smem:[#allocation19_spill]] (!%p2923_p0) }
  0xda   : > { %374 = sbr.rel (%p2923_p0) target bundleno = 763 (0x2fb), region = 48 }
  0xdf   : > { %s376_s13 = sand.u32 (!%p2923_p0), 1, %s2924_s21  }
  0xe0   : > { %s2560_s7 = sshll.u32 (!%p2923_p0), %s376_s13, 3  ;;  %s377_s23 = scalar_lea.sflag (!%p2923_p0), [#allocation3], %s376_s13 }
  0xe1   : > { %s380_s11 = scalar_lea.vmem [#allocation2], %s2560_s7 }
  0xe2   : > { %2051 = dma.done.wait (%p2428_p7), %s377_s23, 128  }
  0xe3   : > { %2053 = vsyncadd (%p2428_p7), %s377_s23, 4294967168  ;;  %s2926_s1 = sld [smem:[#allocation18_spill]]  ;;  %s2927_s4 = sld [smem:[#allocation25_spill]] }
  0xe4   : > { %s385_s24 = sand.u32 1, %s2247_s15  }
  0xe5   : > { %s386_s6 = scalar_lea.sflag [#allocation6], %s385_s24 }
  0xe9   : > { %s387_s22 = sand.u32 1, %s2926_s1   ;;  %p2928_p8 = scmp.ne.s32.totalorder %s2927_s4, 0 }
  0xea   : > { %s2571_s18 = sshll.u32 %s387_s22, 4 }
  0xeb   : > { %s389_s10 = scalar_lea.vmem [#allocation5], %s2571_s18 }
  0xec   : > { %2055 = dma.done.wait (%p2928_p8), %s386_s6, 256  }
  0xed   : > { %2057 = vsyncadd (%p2928_p8), %s386_s6, 4294967040  ;;  %s396_s5 = sand.u32 1, %s2076_s25   ;;  %p2929_p7 = scmp.ne.s32.totalorder %s2918_s17, 0 }
  0xee   : > { %s2579_s19 = sshll.u32 %s396_s5, 3 }
  0xef   : > { %s398_s12 = scalar_lea.vmem [#allocation7], %s2579_s19 }
  0xf0   : > { %2059 = dma.done.wait (%p2929_p7), %s386_s6, 128  }
  0xf1   : > { %2061 = vsyncadd (%p2929_p7), %s386_s6, 4294967168  ;;  %p2930_p4 = scmp.eq.s32.totalorder %s2247_s15, 0 }
  0xf3   : > { %2063 = dma.done.wait (%p2930_p4), [#allocation9], 12288   ;;  %p2931_p11 = pmov %p2930_p4 }
  0xf4   : > { %v571_v0 = vld [vmem:[#allocation8 + $0x80] sm:$0xff]  ;;  %v572_v1 = vld [vmem:[#allocation8 + $0x88] sm:$0xff]  ;;  %v573_v5 = vld [vmem:[#allocation8 + $0x90] sm:$0xff]  ;;  %s2932_s15 = sld [smem:[#allocation20_spill]]  ;;  %v459_v31 = vlaneseq  ;;  %s2933_s21 = sld [smem:[#allocation34_spill]] }
  0xf5   : > { %2065 = vsyncadd (%p2931_p11), [#allocation9], 4294955008  ;;  %v555_v2 = vld [vmem:[#allocation8] sm:$0xff]  ;;  %v1527_v3 = vpack.c.bf16 %v572_v1, %v571_v0  ;;  %v556_v4 = vld [vmem:[#allocation8 + $0x8] sm:$0xff]  ;;  %s2934_s20 = sld [smem:[#allocation21_spill]]  ;;  %s2935_s23 = sld [smem:[#allocation36_spill]] }
  0xf6   : > { %v574_v6 = vld [vmem:[#allocation8 + $0x98] sm:$0xff]  ;;  %v1529_v7 = vpack.c.bf16 %v556_v4, %v555_v2  ;;  %v587_v9 = vld [vmem:[#allocation8 + $0x100] sm:$0xff]  ;;  %v588_v10 = vld [vmem:[#allocation8 + $0x108] sm:$0xff]  ;;  %v2591_v41 = vshrl.u32 %v459_v31, 7  ;;  %s2936_s6 = sld [smem:[#allocation26_spill]]  ;;  %s2133_s28 = smov [#allocation11]  }
  0xf7   : > { %v1531_v8 = vpack.c.bf16 %v574_v6, %v573_v5  ;;  %v557_v11 = vld [vmem:[#allocation8 + $0x10] sm:$0xff]  ;;  %1528 = vmatprep.subr.bf16.mxu0 %v1527_v3  ;;  %v1559_v12 = vpack.c.bf16 %v588_v10, %v587_v9  ;;  %v558_v13 = vld [vmem:[#allocation8 + $0x18] sm:$0xff]  ;;  %v575_v14 = vld [vmem:[#allocation8 + $0xa0] sm:$0xff] }
  0xf8   : > { %v576_v15 = vld [vmem:[#allocation8 + $0xa8] sm:$0xff]  ;;  %1530 = vmatpush3.bf16.msra.mxu0 %v1529_v7  ;;  %v1533_v16 = vpack.c.bf16 %v558_v13, %v557_v11  ;;  %v589_v17 = vld [vmem:[#allocation8 + $0x110] sm:$0xff]  ;;  %v590_v18 = vld [vmem:[#allocation8 + $0x118] sm:$0xff]  ;;  %vm538_vm0 = vcmp.lt.s32.totalorder %v2591_v41, 7  ;;  %v462_v13 = vadd.s32 16, %v2591_v41  ;;  %vm485_vm3 = vcmp.ge.s32.totalorder %v2591_v41, 1 }
  0xf9   : > { %1532 = vmatprep.subr.bf16.mxu0 %v1531_v8  ;;  %1560 = vmatprep.subr.bf16.mxu1 %v1559_v12  ;;  %v1535_v19 = vpack.c.bf16 %v576_v15, %v575_v14  ;;  %v1563_v20 = vpack.c.bf16 %v590_v18, %v589_v17  ;;  %v559_v21 = vld [vmem:[#allocation8 + $0x20] sm:$0xff]  ;;  %v560_v22 = vld [vmem:[#allocation8 + $0x28] sm:$0xff]  ;;  %v577_v23 = vld [vmem:[#allocation8 + $0xb0] sm:$0xff]  ;;  %vm497_vm4 = vcmp.lt.s32.totalorder %v2591_v41, 1  ;;  %vm849_vm15 = vcmp.lt.s32.totalorder %v2591_v41, 5 }
  0xfa   : > { %1562 = vmatpush3.bf16.msra.mxu1 %v1559_v12  ;;  %v578_v24 = vld [vmem:[#allocation8 + $0xb8] sm:$0xff]  ;;  %v591_v25 = vld [vmem:[#allocation8 + $0x120] sm:$0xff]  ;;  %v592_v26 = vld [vmem:[#allocation8 + $0x128] sm:$0xff]  ;;  %s1292_s17 = sshll.u32 %s2932_s15, 4  ;;  %v1537_v28 = vpack.c.bf16 %v560_v22, %v559_v21  ;;  %v461_v12 = vadd.s32 8, %v2591_v41  ;;  %s1313_s4 = sshll.u32 %s2932_s15, 1 }
  0xfb   : > { %1564 = vmatprep.subr.bf16.mxu1 %v1563_v20  ;;  %v1567_v27 = vpack.c.bf16 %v592_v26, %v591_v25  ;;  %v593_v29 = vld [vmem:[#allocation8 + $0x130] sm:$0xff]  ;;  %v594_v30 = vld [vmem:[#allocation8 + $0x138] sm:$0xff]  ;;  %v1539_v32 = vpack.c.bf16 %v578_v24, %v577_v23  ;;  %v579_v35 = vld [vmem:[#allocation8 + $0xc0] sm:$0xff]  ;;  %s1293_s27 = sadd.s32 4294967288, %s1292_s17  ;;  %s2937_s17 = sld [smem:[#allocation37_spill]] }
  0xfc   : > { %1534 = vmatpush3.bf16.msra.mxu0 %v1533_v16  ;;  %v561_v33 = vld [vmem:[#allocation8 + $0x30] sm:$0xff]  ;;  %v562_v34 = vld [vmem:[#allocation8 + $0x38] sm:$0xff]  ;;  %v580_v36 = vld [vmem:[#allocation8 + $0xc8] sm:$0xff]  ;;  %v1571_v37 = vpack.c.bf16 %v594_v30, %v593_v29  ;;  %v2593_v45 = vstv %s1293_s27  ;;  %p2938_p9 = scmp.ne.s32.totalorder %s2936_s6, 0 }
  0xfd   : > { %1536 = vmatprep.subr.bf16.mxu0 %v1535_v19  ;;  %v1541_v38 = vpack.c.bf16 %v562_v34, %v561_v33  ;;  %v595_v39 = vld [vmem:[#allocation8 + $0x140] sm:$0xff]  ;;  %v596_v40 = vld [vmem:[#allocation8 + $0x148] sm:$0xff]  ;;  %v1543_v42 = vpack.c.bf16 %v580_v36, %v579_v35  ;;  %v581_v46 = vld [vmem:[#allocation8 + $0xd0] sm:$0xff]  ;;  %v2602_v55 = vadd.s32 %v2593_v45, %v2591_v41  ;;  %v2633_v19 = vadd.s32 24, %v2591_v41 }
  0xfe   : > { %1566 = vmatpush3.bf16.msra.mxu1 %v1563_v20  ;;  %v563_v43 = vld [vmem:[#allocation8 + $0x40] sm:$0xff]  ;;  %v564_v44 = vld [vmem:[#allocation8 + $0x48] sm:$0xff]  ;;  %v582_v47 = vld [vmem:[#allocation8 + $0xd8] sm:$0xff]  ;;  %v1575_v48 = vpack.c.bf16 %v596_v40, %v595_v39  ;;  %v2650_v30 = vadd.s32 %v2593_v45, %v462_v13 }
  0xff   : > { %1568 = vmatprep.subr.bf16.mxu1 %v1567_v27  ;;  %v2597_v49 = vld [vmem:[%s380_s11] sm:$0xff]  ;;  %v1545_v50 = vpack.c.bf16 %v564_v44, %v563_v43  ;;  %v565_v51 = vld [vmem:[#allocation8 + $0x50] sm:$0xff]  ;;  %v598_v53 = vld [vmem:[#allocation8 + $0x158] sm:$0xff]  ;;  %v1547_v56 = vpack.c.bf16 %v582_v47, %v581_v46  ;;  %v514_v0 = vadd.s32 1, %v2602_v55  ;;  %v2654_v34 = vadd.s32 %v2593_v45, %v2633_v19  ;;  %s1658_s11 = smul.u32 6, %s2934_s20 }
 0x100   : > { %1538 = vmatpush3.bf16.msra.mxu0 %v1537_v28  ;;  %v597_v52 = vld [vmem:[#allocation8 + $0x150] sm:$0xff]  ;;  %v473_v54 = vmul.f32 0.1, %v2597_v49  ;;  %v566_v57 = vld [vmem:[#allocation8 + $0x58] sm:$0xff]  ;;  %v583_v60 = vld [vmem:[#allocation8 + $0xe0] sm:$0xff]  ;;  %v2644_v28 = vadd.s32 %v2593_v45, %v461_v12  ;;  %vm481_vm2 = vcmp.ge.s32.totalorder %v2602_v55, 1 }
 0x101   : > { %1540 = vmatprep.subr.bf16.mxu0 %v1539_v32  ;;  %v2606_v58 = vld [vmem:[%s398_s12] sm:$0xff]  ;;  %v584_v61 = vld [vmem:[#allocation8 + $0xe8] sm:$0xff]  ;;  %v1579_v1 = vpack.c.bf16 %v598_v53, %v597_v52  ;;  %v1549_v3 = vpack.c.bf16 %v566_v57, %v565_v51  ;;  %v599_v4 = vld [vmem:[#allocation8 + $0x160] sm:$0xff]  ;;  %vm518_vm1 = vcmp.lt.s32.totalorder %v514_v0, 48  ;;  %v516_v46 = vadd.s32 1, %v2650_v30  ;;  %s1104_s24 = sadd.s32 %s1658_s11, %s1313_s4 }
 0x102   : > { %1570 = vmatpush3.bf16.msra.mxu1 %v1567_v27  ;;  %v2610_v59 = vld [vmem:[%s389_s10] sm:$0xff]  ;;  %v2613_v62 = vmax.f32 %v2597_v49, %v473_v54  ;;  %v2619_v2 = vld [vmem:[%s389_s10 + $0x8] sm:$0xff]  ;;  %v476_v6 = vmul.f32 0.1, %v2606_v58  ;;  %v1551_v9 = vpack.c.bf16 %v584_v61, %v583_v60  ;;  %v515_v44 = vadd.s32 1, %v2644_v28  ;;  %vm489_vm5 = vmand %vm481_vm2, %vm485_vm3  ;;  %s446_s10 = scalar_lea.vmem [#allocation11], %s2571_s18 }
 0x103   : > { %1572 = vmatprep.subr.bf16.mxu1 %v1571_v37  ;;  %v474_v63 = vmul.f32 0.1, %v2610_v59  ;;  %v600_v5 = vld [vmem:[#allocation8 + $0x168] sm:$0xff]  ;;  %v567_v10 = vld [vmem:[#allocation8 + $0x60] sm:$0xff]  ;;  %v585_v14 = vld [vmem:[#allocation8 + $0xf0] sm:$0xff]  ;;  %vm520_vm7 = vcmp.lt.s32.totalorder %v516_v46, 48 }
 0x104   : > { %1542 = vmatpush3.bf16.msra.mxu0 %v1541_v38  ;;  %674 = vmatprep.mubr.f32.mxu0 %v2613_v62  ;;  %v534_v8 = vrot.slane %v2613_v62, 1  ;;  %v568_v11 = vld [vmem:[#allocation8 + $0x68] sm:$0xff]  ;;  %v586_v15 = vld [vmem:[#allocation8 + $0xf8] sm:$0xff]  ;;  %v475_v17 = vmul.f32 0.1, %v2619_v2  ;;  %v1583_v18 = vpack.c.bf16 %v600_v5, %v599_v4  ;;  %v2636_v21 = vmax.f32 %v2606_v58, %v476_v6  ;;  %v601_v22 = vld [vmem:[#allocation8 + $0x170] sm:$0xff] }
 0x105   : > { %1544 = vmatprep.subr.bf16.mxu0 %v1543_v42  ;;  %v2624_v7 = vmax.f32 %v2610_v59, %v474_v63  ;;  %v1553_v20 = vpack.c.bf16 %v568_v11, %v567_v10  ;;  %v602_v23 = vld [vmem:[#allocation8 + $0x178] sm:$0xff]  ;;  %v1555_v25 = vpack.c.bf16 %v586_v15, %v585_v14  ;;  %v569_v26 = vld [vmem:[#allocation8 + $0x70] sm:$0xff]  ;;  %v882_v31 = vld [vmem:[#allocation10 + $0x80] sm:$0xff]  ;;  %v493_v36 = vrot.slane %v2613_v62, 7  ;;  %s1107_s5 = sshll.u32 %s446_s10, 4  ;;  %s1314_s19 = sshll.u32 %s1104_s24, 7  ;;  %s2750_s5 = int_to_ptr.vmem [resolvable:$true] %s1107_s5 }
 0x106   : > { %1574 = vmatpush3.bf16.msra.mxu1 %v1571_v37  ;;  %v570_v27 = vld [vmem:[#allocation8 + $0x78] sm:$0xff]  ;;  %v2647_v29 = vmax.f32 %v2619_v2, %v475_v17  ;;  %v883_v32 = vld [vmem:[#allocation10 + $0x88] sm:$0xff]  ;;  %v1587_v33 = vpack.c.bf16 %v602_v23, %v601_v22  ;;  %v496_v37 = vrot.slane %v2636_v21, 7  ;;  %v898_v38 = vld [vmem:[#allocation10 + $0x100] sm:$0xff]  ;;  %v537_v47 = vrot.slane %v2636_v21, 1  ;;  %s2748_s27 = scalar_lea.hbm %s2937_s17, %s1314_s19  ;;  %s2755_s18 = scalar_lea.sflag [#allocation4], %s387_s22 }
 0x107   : > { %1576 = vmatprep.subr.bf16.mxu1 %v1575_v48  ;;  %v535_v16 = vrot.slane %v2624_v7, 1  ;;  %v1557_v35 = vpack.c.bf16 %v570_v27, %v569_v26  ;;  %v899_v39 = vld [vmem:[#allocation10 + $0x108] sm:$0xff]  ;;  %v1591_v40 = vpack.c.bf16 %v883_v32, %v882_v31  ;;  %v866_v42 = vld [vmem:[#allocation10] sm:$0xff]  ;;  %v494_v53 = vrot.slane %v2624_v7, 7  ;;  %v900_v54 = vld [vmem:[#allocation10 + $0x110] sm:$0xff]  ;;  %s1966_s16 = scalar_lea.vmem %s2750_s5, 256 }
 0x108   : > { %1546 = vmatpush3.bf16.msra.mxu0 %v1545_v50  ;;  %v867_v43 = vld [vmem:[#allocation10 + $0x8] sm:$0xff]  ;;  %v536_v45 = vrot.slane %v2647_v29, 1  ;;  %v525_v50 = vadd.s32 1, %v2633_v19  ;;  %v1623_v51 = vpack.c.bf16 %v899_v39, %v898_v38  ;;  %v501_v52 = vsel %vm497_vm4, %v496_v37, %v493_v36  ;;  %v884_v5 = vld [vmem:[#allocation10 + $0x90] sm:$0xff]  ;;  %v885_v6 = vld [vmem:[#allocation10 + $0x98] sm:$0xff]  ;;  %p1967_p13 = scmp.ne.s32.totalorder %s2750_s5, %s1966_s16 }
 0x109   : > { %1548 = vmatprep.subr.bf16.mxu0 %v1547_v56  ;;  %v541_v24 = vsel %vm538_vm0, %v534_v8, %v535_v16  ;;  %v901_v56 = vld [vmem:[#allocation10 + $0x118] sm:$0xff]  ;;  %v1593_v57 = vpack.c.bf16 %v867_v43, %v866_v42  ;;  %vm519_vm6 = vcmp.lt.s32.totalorder %v515_v44, 48  ;;  %vm482_vm10 = vcmp.ge.s32.totalorder %v2644_v28, 1  ;;  %v868_v10 = vld [vmem:[#allocation10 + $0x10] sm:$0xff]  ;;  %v886_v14 = vld [vmem:[#allocation10 + $0xa0] sm:$0xff] }
 0x10a   : > { %1578 = vmatpush3.bf16.msra.mxu1 %v1575_v48  ;;  %1483 = vmatprep.mubr.msk.f32.mxu1 %vm518_vm1, %v541_v24  ;;  %v517_v48 = vadd.s32 1, %v2654_v34  ;;  %v540_v60 = vsel %vm538_vm0, %v535_v16, %v536_v45  ;;  %v539_v61 = vsel %vm538_vm0, %v536_v45, %v537_v47  ;;  %vm529_vm9 = vcmp.lt.s32.totalorder %v525_v50, 32  ;;  %v869_v11 = vld [vmem:[#allocation10 + $0x18] sm:$0xff]  ;;  %v887_v15 = vld [vmem:[#allocation10 + $0xa8] sm:$0xff]  ;;  %v904_v16 = vld [vmem:[#allocation10 + $0x130] sm:$0xff]  ;;  %p1968_p12 = pnand %p1967_p13, %p2938_p9 }
 0x10b   : > { %1580 = vmatprep.subr.bf16.mxu1 %v1579_v1  ;;  %v1627_v63 = vpack.c.bf16 %v901_v56, %v900_v54  ;;  %v500_v0 = vsel %vm497_vm4, %v493_v36, %v494_v53  ;;  %vm483_vm12 = vcmp.ge.s32.totalorder %v2650_v30, 1  ;;  %vm484_vm13 = vcmp.ge.s32.totalorder %v2654_v34, 1  ;;  %v871_v22 = vld [vmem:[#allocation10 + $0x28] sm:$0xff]  ;;  %v888_v24 = vld [vmem:[#allocation10 + $0xb0] sm:$0xff]  ;;  %v906_v26 = vld [vmem:[#allocation10 + $0x140] sm:$0xff] }
 0x10c   : > { %1550 = vmatpush3.bf16.msra.mxu0 %v1549_v3  ;;  %vm521_vm8 = vcmp.lt.s32.totalorder %v517_v48, 48  ;;  %v542_v3 = vsel %vm538_vm0, %v537_v47, %v534_v8  ;;  %v1595_v8 = vpack.c.bf16 %v885_v6, %v884_v5  ;;  %v1597_v13 = vpack.c.bf16 %v869_v11, %v868_v10  ;;  %v872_v31 = vld [vmem:[#allocation10 + $0x30] sm:$0xff]  ;;  %v873_v32 = vld [vmem:[#allocation10 + $0x38] sm:$0xff]  ;;  %v890_v36 = vld [vmem:[#allocation10 + $0xc0] sm:$0xff]  ;;  %p1969_p6 = pneg %p1968_p12 }
 0x10d   : > { %1552 = vmatprep.subr.bf16.mxu0 %v1551_v9  ;;  %vm533_vm11 = vmand %vm521_vm8, %vm529_vm9  ;;  %v903_v9 = vld [vmem:[#allocation10 + $0x128] sm:$0xff]  ;;  %v1599_v17 = vpack.c.bf16 %v887_v15, %v886_v14  ;;  %v908_v38 = vld [vmem:[#allocation10 + $0x150] sm:$0xff]  ;;  %vm792_vm1 = vcmp.ge.s32.totalorder %v2602_v55, 3  ;;  %vm796_vm2 = vcmp.ge.s32.totalorder %v2591_v41, 3  ;;  %vm793_vm9 = vcmp.ge.s32.totalorder %v2644_v28, 3 }
 0x10e   : > { %1582 = vmatpush3.bf16.msra.mxu1 %v1579_v1  ;;  %v495_v1 = vrot.slane %v2647_v29, 7  ;;  %v874_v42 = vld [vmem:[#allocation10 + $0x40] sm:$0xff]  ;;  %v875_v43 = vld [vmem:[#allocation10 + $0x48] sm:$0xff]  ;;  %v892_v46 = vld [vmem:[#allocation10 + $0xd0] sm:$0xff] }
 0x10f   : > { %1584 = vmatprep.subr.bf16.mxu1 %v1583_v18  ;;  %v1609_v45 = vpack.c.bf16 %v875_v43, %v874_v42  ;;  %v893_v47 = vld [vmem:[#allocation10 + $0xd8] sm:$0xff]  ;;  %v910_v48 = vld [vmem:[#allocation10 + $0x160] sm:$0xff]  ;;  %v896_v5 = vld [vmem:[#allocation10 + $0xf0] sm:$0xff] }
 0x110   : > { %1554 = vmatpush3.bf16.msra.mxu0 %v1553_v20  ;;  %v499_v4 = vsel %vm497_vm4, %v494_v53, %v495_v1  ;;  %v498_v62 = vsel %vm497_vm4, %v495_v1, %v496_v37  ;;  %v870_v20 = vld [vmem:[#allocation10 + $0x20] sm:$0xff]  ;;  %v891_v37 = vld [vmem:[#allocation10 + $0xc8] sm:$0xff]  ;;  %v1611_v50 = vpack.c.bf16 %v893_v47, %v892_v46  ;;  %v877_v53 = vld [vmem:[#allocation10 + $0x58] sm:$0xff] }
 0x111   : > { %1556 = vmatprep.subr.bf16.mxu0 %v1555_v25  ;;  %v1601_v23 = vpack.c.bf16 %v871_v22, %v870_v20  ;;  %v889_v25 = vld [vmem:[#allocation10 + $0xb8] sm:$0xff]  ;;  %v1607_v39 = vpack.c.bf16 %v891_v37, %v890_v36 }
 0x112   : > { %1586 = vmatpush3.bf16.msra.mxu1 %v1583_v18  ;;  %v905_v18 = vld [vmem:[#allocation10 + $0x138] sm:$0xff]  ;;  %v1603_v27 = vpack.c.bf16 %v889_v25, %v888_v24 }
 0x113   : > { %1588 = vmatprep.subr.bf16.mxu1 %v1587_v33  ;;  %v897_v6 = vld [vmem:[#allocation10 + $0xf8] sm:$0xff] }
 0x114   : > { %1558 = vmatpush3.bf16.msra.mxu0 %v1557_v35  ;;  %v1605_v35 = vpack.c.bf16 %v873_v32, %v872_v31 }
 0x115   : > { %1592 = vmatprep.subr.bf16.mxu0 %v1591_v40  ;;  %v909_v40 = vld [vmem:[#allocation10 + $0x158] sm:$0xff] }
 0x116   : > { %1590 = vmatpush3.bf16.msra.mxu1 %v1587_v33  ;;  %v1643_v44 = vpack.c.bf16 %v909_v40, %v908_v38  ;;  %v825_v40 = vadd.s32 3, %v2602_v55 }
 0x117   : > { %1295 = vmatmul.mubr.msk.f32.vlgmr.msra.gmra.mrb[0].mxu0 %vm489_vm5, %v501_v52  ;;  %1624 = vmatprep.subr.bf16.mxu1 %v1623_v51  ;;  %v876_v52 = vld [vmem:[#allocation10 + $0x50] sm:$0xff]  ;;  %vm800_vm5 = vmand %vm792_vm1, %vm796_vm2 }
 0x118   : > { %679 = vmatprep.mubr.f32.mxu0 %v2624_v7  ;;  %1594 = vmatpush3.bf16.msra.mxu0 %v1593_v57  ;;  %v902_v7 = vld [vmem:[#allocation10 + $0x120] sm:$0xff]  ;;  %v1613_v56 = vpack.c.bf16 %v877_v53, %v876_v52  ;;  %vm829_vm14 = vcmp.lt.s32.totalorder %v825_v40, 48  ;;  %v828_v52 = vadd.s32 3, %v2654_v34 }
 0x119   : > { %1484 = vmatmul.mubr.msk.f32.vlgmr.msra.gmra.mrb[0].mxu1 %vm519_vm6, %v540_v60  ;;  %v1631_v12 = vpack.c.bf16 %v903_v9, %v902_v7  ;;  %1596 = vmatprep.subr.bf16.mxu0 %v1595_v8  ;;  %v894_v57 = vld [vmem:[#allocation10 + $0xe0] sm:$0xff]  ;;  %v895_v60 = vld [vmem:[#allocation10 + $0xe8] sm:$0xff]  ;;  %v1619_v7 = vpack.c.bf16 %v897_v6, %v896_v5  ;;  %v880_v8 = vld [vmem:[#allocation10 + $0x70] sm:$0xff] }
 0x11a   : > { %1486 = vmatprep.mubr.msk.f32.mxu1 %vm520_vm7, %v539_v61  ;;  %1626 = vmatpush3.bf16.msra.mxu1 %v1623_v51  ;;  %v911_v51 = vld [vmem:[#allocation10 + $0x168] sm:$0xff]  ;;  %v912_v61 = vld [vmem:[#allocation10 + $0x170] sm:$0xff]  ;;  %v881_v9 = vld [vmem:[#allocation10 + $0x78] sm:$0xff]  ;;  %vm832_vm3 = vcmp.lt.s32.totalorder %v828_v52, 48  ;;  %vm808_vm7 = vcmp.lt.s32.totalorder %v2591_v41, 3 }
 0x11b   : > { %1296 = vmatmul.mubr.msk.f32.gmra.mrb[2].mxu0 %vm482_vm10, %v500_v0  ;;  %1628 = vmatprep.subr.bf16.mxu1 %v1627_v63  ;;  %v1647_v54 = vpack.c.bf16 %v911_v51, %v910_v48  ;;  %v913_v0 = vld [vmem:[#allocation10 + $0x178] sm:$0xff]  ;;  %v1621_v10 = vpack.c.bf16 %v881_v9, %v880_v8  ;;  %vm794_vm10 = vcmp.ge.s32.totalorder %v2650_v30, 3 }
 0x11c   : > { %684 = vmatprep.mubr.f32.mxu0 %v2647_v29  ;;  %1598 = vmatpush3.bf16.msra.mxu0 %v1597_v13  ;;  %v907_v29 = vld [vmem:[#allocation10 + $0x148] sm:$0xff]  ;;  %v1651_v1 = vpack.c.bf16 %v913_v0, %v912_v61  ;;  %v1294_v13 = vld [vmem:[%s2933_s21] ss:$0 sm:$0xff]  ;;  %v827_v61 = vadd.s32 3, %v2650_v30  ;;  %s1970_s21 = sshll.u32 %s2133_s28, 4  ;;  %s1971_s21 = int_to_ptr.vmem [resolvable:$false] %s1970_s21 }
 0x11d   : > { %1487 = vmatmul.mubr.msk.f32.gmra.mrb[2].mxu1 %vm533_vm11, %v542_v3  ;;  %1600 = vmatprep.subr.bf16.mxu0 %v1599_v17  ;;  %v1639_v33 = vpack.c.bf16 %v907_v29, %v906_v26  ;;  %v878_v3 = vld [vmem:[#allocation10 + $0x60] sm:$0xff]  ;;  %vm795_vm11 = vcmp.ge.s32.totalorder %v2654_v34, 3  ;;  %s1972_s20 = scalar_lea.vmem %s1971_s21, 512  ;;  %p1973_p5 = scmp.lt.s32.totalorder %s2750_s5, %s1971_s21 }
 0x11e   : > { %1630 = vmatpush3.bf16.msra.mxu1 %v1627_v63  ;;  %v1615_v63 = vpack.c.bf16 %v895_v60, %v894_v57  ;;  %vm831_vm6 = vcmp.lt.s32.totalorder %v827_v61, 48  ;;  %p1974_p1 = scmp.lt.s32.totalorder %s1972_s20, %s1966_s16 }
 0x11f   : > { %1297 = vmatmul.mubr.msk.f32.gmra.mrb[4].mxu0 %vm483_vm12, %v499_v4  ;;  %1632 = vmatprep.subr.bf16.mxu1 %v1631_v12  ;;  %v879_v4 = vld [vmem:[#allocation10 + $0x68] sm:$0xff] }
 0x120   : > { %689 = vmatprep.mubr.f32.mxu0 %v2636_v21  ;;  %v1635_v21 = vpack.c.bf16 %v905_v18, %v904_v16  ;;  %1602 = vmatpush3.bf16.msra.mxu0 %v1601_v23  ;;  %p1975_p3 = por %p1974_p1, %p1973_p5 }
 0x121   : > { %1604 = vmatprep.subr.bf16.mxu0 %v1603_v27 }
 0x122   : > { %1634 = vmatpush3.bf16.msra.mxu1 %v1631_v12  ;;  %p1976_p2 = pnand %p1975_p3, %p1969_p6 }
 0x123   : > { %1298 = vmatmul.mubr.msk.f32.gmra.mrb[6].mxu0 %vm484_vm13, %v498_v62  ;;  %1636 = vmatprep.subr.bf16.mxu1 %v1635_v21  ;;  %v1617_v62 = vpack.c.bf16 %v879_v4, %v878_v3 }
 0x124   : > { %1606 = vmatpush3.bf16.msra.mxu0 %v1605_v35 }
 0x125   : > { %1608 = vmatprep.subr.bf16.mxu0 %v1607_v39 }
 0x126   : > { %1638 = vmatpush3.bf16.msra.mxu1 %v1635_v21 }
 0x127   : > { %1640 = vmatprep.subr.bf16.mxu1 %v1639_v33 }
 0x128   : > { %1610 = vmatpush3.bf16.msra.mxu0 %v1609_v45 }
 0x129   : > { %1612 = vmatprep.subr.bf16.mxu0 %v1611_v50 }
 0x12a   : > { %1642 = vmatpush3.bf16.msra.mxu1 %v1639_v33 }
 0x12b   : > { %1644 = vmatprep.subr.bf16.mxu1 %v1643_v44 }
 0x12c   : > { %1614 = vmatpush3.bf16.msra.mxu0 %v1613_v56  ;;  %v836_v56 = vadd.s32 3, %v2633_v19 }
 0x12d   : > { %1616 = vmatprep.subr.bf16.mxu0 %v1615_v63 }
 0x12e   : > { %1646 = vmatpush3.bf16.msra.mxu1 %v1643_v44  ;;  %vm840_vm4 = vcmp.lt.s32.totalorder %v836_v56, 32 }
 0x12f   : > { %1648 = vmatprep.subr.bf16.mxu1 %v1647_v54  ;;  %vm844_vm8 = vmand %vm832_vm3, %vm840_vm4 }
 0x130   : > { %1618 = vmatpush3.bf16.msra.mxu0 %v1617_v62 }
 0x131   : > { %1620 = vmatprep.subr.bf16.mxu0 %v1619_v7 }
 0x132   : > { %1650 = vmatpush3.bf16.msra.mxu1 %v1647_v54 }
 0x133   : > { %1652 = vmatprep.subr.bf16.mxu1 %v1651_v1 }
 0x134   : > { %1622 = vmatpush3.bf16.msra.mxu0 %v1621_v10 }
 0x136   : > { %1654 = vmatpush3.bf16.msra.mxu1 %v1651_v1 }
 0x1ea   : > { %v1355_v11 = vpop.f32.mrb[0].mxu0 }
 0x1eb   : > { %v1356_v12 = vpop.f32.mrb[1].mxu0 }
 0x1ec   : > { %v1357_v14 = vadd.f32 %v1356_v12, %v1355_v11  ;;  %v1485_v15 = vpop.f32.mrb[0].mxu1 }
 0x1ed   : > { %v761_v16 = vpop.f32.mrb[1].mxu1 }
 0x1ee   : > { %v1358_v17 = vpop.f32.mrb[2].mxu0  ;;  %v677_v18 = vadd.f32 %v1357_v14, %v1294_v13  ;;  %v1303_v14 = vld [vmem:[%s2935_s23] ss:$0 sm:$0xff] }
 0x1ef   : > { %v1359_v20 = vpop.f32.mrb[3].mxu0 }
 0x1f0   : > { %v1360_v21 = vadd.f32 %v1359_v20, %v1358_v17  ;;  %v762_v22 = vadd.f32 %v761_v16, %v677_v18  ;;  %v1488_v23 = vpop.f32.mrb[2].mxu1 }
 0x1f1   : > { %v771_v24 = vpop.f32.mrb[3].mxu1 }
 0x1f2   : > { %v682_v25 = vadd.f32 %v1360_v21, %v1294_v13  ;;  %v780_v26 = vadd.f32 %v762_v22, %v2597_v49  ;;  %v1361_v27 = vpop.f32.mrb[4].mxu0 }
 0x1f3   : > { %v1362_v29 = vpop.f32.mrb[5].mxu0 }
 0x1f4   : > { %v767_v31 = vadd.f32 %v1485_v15, %v682_v25  ;;  %v784_v32 = vmul.f32 0.1, %v780_v26  ;;  %v1363_v33 = vadd.f32 %v1362_v29, %v1361_v27 }
 0x1f6   : > { %v2700_v35 = vadd.f32 %v767_v31, %v2610_v59  ;;  %v1364_v36 = vpop.f32.mrb[6].mxu0  ;;  %v687_v37 = vadd.f32 %v1363_v33, %v1294_v13  ;;  %v788_v38 = vmax.f32 %v780_v26, %v784_v32  ;;  %v826_v59 = vadd.s32 3, %v2644_v28 }
 0x1f7   : > { %v1365_v39 = vpop.f32.mrb[7].mxu0 }
 0x1f8   : > { %v785_v42 = vmul.f32 0.1, %v2700_v35  ;;  %v1366_v43 = vadd.f32 %v1365_v39, %v1364_v36  ;;  %v772_v44 = vadd.f32 %v771_v24, %v687_v37  ;;  %985 = vmatprep.mubr.f32.mxu0 %v788_v38  ;;  %v845_v50 = vrot.slane %v788_v38, 3 }
 0x1f9   : > { %vm830_vm0 = vcmp.lt.s32.totalorder %v826_v59, 48  ;;  %v804_v0 = vrot.slane %v788_v38, 5 }
 0x1fa   : > { %v789_v49 = vmax.f32 %v2700_v35, %v785_v42  ;;  %v692_v45 = vadd.f32 %v1366_v43, %v1294_v13  ;;  %v2706_v46 = vadd.f32 %v772_v44, %v2619_v2 }
 0x1fc   : > { %v777_v47 = vadd.f32 %v1488_v23, %v692_v45  ;;  %v786_v48 = vmul.f32 0.1, %v2706_v46  ;;  %v846_v51 = vrot.slane %v789_v49, 3  ;;  %v805_v62 = vrot.slane %v789_v49, 5 }
 0x1fe   : > { %v783_v53 = vadd.f32 %v777_v47, %v2606_v58  ;;  %v790_v54 = vmax.f32 %v2706_v46, %v786_v48  ;;  %v852_v2 = vsel %vm849_vm15, %v845_v50, %v846_v51  ;;  %v811_v5 = vsel %vm808_vm7, %v804_v0, %v805_v62 }
 0x1ff   : > { %1521 = vmatprep.mubr.msk.f32.mxu1 %vm829_vm14, %v852_v2 }
 0x200   : > { %v787_v57 = vmul.f32 0.1, %v783_v53  ;;  %v847_v60 = vrot.slane %v790_v54, 3  ;;  %v806_v6 = vrot.slane %v790_v54, 5 }
 0x202   : > { %v791_v63 = vmax.f32 %v783_v53, %v787_v57  ;;  %v851_v58 = vsel %vm849_vm15, %v846_v51, %v847_v60  ;;  %v810_v7 = vsel %vm808_vm7, %v805_v62, %v806_v6 }
 0x203   : > { %1522 = vmatmul.mubr.msk.f32.vlgmr.msra.gmra.mrb[4].mxu1 %vm830_vm0, %v851_v58 }
 0x204   : > { %v807_v19 = vrot.slane %v791_v63, 5  ;;  %v848_v1 = vrot.slane %v791_v63, 3 }
 0x206   : > { %v812_v55 = vsel %vm808_vm7, %v807_v19, %v804_v0  ;;  %v850_v3 = vsel %vm849_vm15, %v847_v60, %v848_v1  ;;  %v853_v4 = vsel %vm849_vm15, %v848_v1, %v845_v50  ;;  %v809_v28 = vsel %vm808_vm7, %v806_v6, %v807_v19 }
 0x207   : > { %1304 = vmatmul.mubr.msk.f32.vlgmr.msra.gmra.mrb[8].mxu0 %vm800_vm5, %v812_v55  ;;  %1524 = vmatprep.mubr.msk.f32.mxu1 %vm831_vm6, %v850_v3 }
 0x208   : > { %989 = vmatprep.mubr.f32.mxu0 %v789_v49  ;;  %1525 = vmatmul.mubr.msk.f32.gmra.mrb[6].mxu1 %vm844_vm8, %v853_v4 }
 0x20b   : > { %1305 = vmatmul.mubr.msk.f32.gmra.mrb[10].mxu0 %vm793_vm9, %v811_v5 }
 0x20c   : > { %994 = vmatprep.mubr.f32.mxu0 %v790_v54 }
 0x20f   : > { %1306 = vmatmul.mubr.msk.f32.gmra.mrb[12].mxu0 %vm794_vm10, %v810_v7 }
 0x210   : > { %999 = vmatprep.mubr.f32.mxu0 %v791_v63 }
 0x213   : > { %1307 = vmatmul.mubr.msk.f32.gmra.mrb[14].mxu0 %vm795_vm11, %v809_v28 }
 0x2d6   : > { %v1523_v8 = vpop.f32.mrb[4].mxu1 }
 0x2d7   : > { %v1070_v9 = vpop.f32.mrb[5].mxu1 }
 0x2da   : > { %v1419_v10 = vpop.f32.mrb[8].mxu0 }
 0x2db   : > { %v1420_v11 = vpop.f32.mrb[9].mxu0  ;;  %v1526_v12 = vpop.f32.mrb[6].mxu1 }
 0x2dc   : > { %v1079_v30 = vpop.f32.mrb[7].mxu1 }
 0x2de   : > { %v1422_v13 = vpop.f32.mrb[10].mxu0 }
 0x2df   : > { %v1423_v15 = vpop.f32.mrb[11].mxu0 }
 0x2e0   : > { %v1424_v16 = vadd.f32 %v1423_v15, %v1422_v13 }
 0x2e2   : > { %v992_v34 = vadd.f32 %v1424_v16, %v1303_v14  ;;  %v1425_v41 = vpop.f32.mrb[12].mxu0 }
 0x2e3   : > { %v1426_v17 = vpop.f32.mrb[13].mxu0 }
 0x2e4   : > { %v1075_v18 = vadd.f32 %v1523_v8, %v992_v34  ;;  %v1427_v20 = vadd.f32 %v1426_v17, %v1425_v41 }
 0x2e6   : > { %v1087_v21 = vadd.f32 %v1075_v18, %v2700_v35  ;;  %v997_v22 = vadd.f32 %v1427_v20, %v1303_v14  ;;  %v1428_v23 = vpop.f32.mrb[14].mxu0 }
 0x2e7   : > { %v1429_v24 = vpop.f32.mrb[15].mxu0 }
 0x2e8   : > { %1089 = vst [vmem:[%s446_s10] sm:$0xff] %v1087_v21  ;;  %v1080_v25 = vadd.f32 %v1079_v30, %v997_v22 }
 0x2ea   : > { %v1088_v26 = vadd.f32 %v1080_v25, %v2706_v46 }
 0x2ec   : > { %1090 = vst [vmem:[%s446_s10 + $0x8] sm:$0xff] %v1088_v26 }
 0x2ed   : > { %1979 = shalt.err (!%p1976_p2)
}
 0x2ee   : > { %s1980_s1 = scalar_lea.hbm %s2748_s27, 256  ;;  %s1984_s7 = scalar_lea.hbm %s2937_s17, 1536 }
 0x2ef   : > { %p1981_p10 = scmp.ne.s32.totalorder %s2748_s27, %s1980_s1  ;;  %p1985_p7 = scmp.lt.u32.totalorder %s2748_s27, %s2937_s17 }
 0x2f0   : > { %p1986_p4 = scmp.lt.u32.totalorder %s1984_s7, %s1980_s1  ;;  %p1988_p13 = scmp.lt.u32.totalorder %s1980_s1, %s2748_s27 }
 0x2f1   : > { %p1982_p0 = pnand %p1981_p10, %p2938_p9 }
 0x2f2   : > { %p1987_p11 = por %p1986_p4, %p1985_p7 }
 0x2f3   : > { %p1983_p8 = pneg %p1982_p0 }
 0x2f4   : > { %p1989_p12 = por %p1988_p13, %p1987_p11 }
 0x2f6   : > { %p1990_p6 = pnand %p1989_p12, %p1983_p8 }
 0x2f8   : > { %1993 = shalt.err (!%p1990_p6)
}
 0x2f9   : > { %s2134_s4 = smov 128   ;;  %s2135_s24 = smov 8  }
 0x2fa   : > { %1673 = dma.vmem_to_hbm [thread:$0]  (%p2938_p9), %s2750_s5, 256, %s2748_s27, %s2755_s18, %s2134_s4, %s2134_s4, %s2135_s24  }
 0x2fb PF: > { %s2939_s10 = sld [smem:[#allocation17_spill]]  ;;  %s2940_s19 = sld [smem:[#allocation27_spill]] }
 0x2fc   : > { %p1701_p5 = scmp.ge.s32.totalorder %s2124_s14, 2 }
 0x301   : > { %s1122_s12 = sand.u32 1, %s2939_s10   ;;  %p2941_p1 = scmp.ne.s32.totalorder %s2940_s19, 0 }
 0x302   : > { %s1123_s15 = scalar_lea.sflag [#allocation4], %s1122_s12 }
 0x303   : > { %p1693_p3 = pnand %p1701_p5, %p2941_p1 }
 0x305   : > { %2067 = dma.done.wait (!%p1693_p3), %s1123_s15, 256  }
 0x306   : > { %2069 = vsyncadd (!%p1693_p3), %s1123_s15, 4294967040  ;;  %s27_s14 = sadd.s32 1, %s2124_s14   ;;  %s2943_s27 = sld [smem:[#allocation18_spill]] }
 0x307   : > { %p2784_p2 = scmp.ge.s32.totalorder %s27_s14, 8   ;;  %s2944_s6 = sld [smem:[#allocation19_spill]] }
 0x308   : > { %s2945_s5 = smov %s2444_s30  ;;  %s2946_s10 = sld [smem:[#allocation22_spill]] }
 0x309   : > { %s2947_s11 = sld [smem:[#allocation23_spill]]  ;;  %s2948_s12 = sld [smem:[#allocation29_spill]] }
 0x30a   : > { %s2949_s13 = sld [smem:[#allocation30_spill]]  ;;  %s2950_s24 = smov %s2076_s25 }
 0x30b   : > { %s2951_s25 = smov %s2080_s26  ;;  %s2952_s26 = smov %s2514_s8 }
 0x30c   : > { %s2953_s28 = smov %s2092_s29  ;;  %s2954_s29 = smov %s2441_s3 }
 0x30d   : > { %s2955_s30 = smov %s2944_s6  ;;  %s2956_s8 = smov %s2104_s9 }
 0x30e   : > { %s2957_s9 = smov %s2945_s5  ;;  %26 = sbr.rel (!%p2784_p2) target bundleno = 20 (0x14), region = 125 }
 0x315   :  { %1128 = vsyncpa [#allocation3], 1 }
 0x316   :  { %1130 = vsyncpa [#allocation3 + $0x1], 1 }
 0x317   :  { %1131 = vsyncpa [#allocation6], 1 }
 0x318   :  { %1133 = vsyncpa [#allocation6 + $0x1], 1 }
 0x319   :  { %1134 = vsyncpa [#allocation9], 1 }
 0x31a   :  { %1135 = vsyncpa [#allocation4], 1 }
 0x31b   :  { %1137 = vsyncpa [#allocation4 + $0x1], 1 }

</bundles_post_ra>
